<compile_context>
chip_gen: v5e
topology: v5e:2x2
jax: 0.10.0
libtpu: 0.0.40
codegen_flags: <defaults>
</compile_context>

<pallas_src>
import jax
import jax.numpy as jnp
from jax.experimental import pallas as pl
from jax.experimental.pallas import tpu as pltpu


def _round_up(n, m):
    return ((n + m - 1) // m) * m


# Single shared constant index map for all weights/biases (avoids the
# late-binding-lambda-in-a-loop footgun noted in review).
def _const_idx(i):
    return (0, 0)


def mlp_kernel(x_ref,
               w1_ref, b1_ref,
               w2_ref, b2_ref,
               w3_ref, b3_ref,
               w4_ref, b4_ref,
               w5_ref, b5_ref,
               o_ref):
    x = x_ref[...]                                               # (1, TN) f32

    # Layer 1: in=1 -> outer product on the VPU (w1: (64,1), b1: (64,1)), f32.
    h = jnp.tanh(w1_ref[...] * x + b1_ref[...])                  # (64, TN)

    # Layers 2-4: bf16 MXU matmuls with f32 accumulation, batch on lane axis.
    h = jnp.dot(w2_ref[...], h.astype(jnp.bfloat16),
                preferred_element_type=jnp.float32) + b2_ref[...]   # (128, TN)
    h = jnp.tanh(h)
    h = jnp.dot(w3_ref[...], h.astype(jnp.bfloat16),
                preferred_element_type=jnp.float32) + b3_ref[...]   # (256, TN)
    h = jnp.tanh(h)
    h = jnp.dot(w4_ref[...], h.astype(jnp.bfloat16),
                preferred_element_type=jnp.float32) + b4_ref[...]   # (128, TN)
    h = jnp.tanh(h)

    # Layer 5: out=1 -> multiply + sublane reduce (VPU + XLU), lane-dense store.
    out = jnp.sum(w5_ref[...] * h, axis=0, keepdims=True) + b5_ref[...]  # (1, TN)
    o_ref[...] = out.astype(o_ref.dtype)


def mlp_forward(x, params, *, tile_n=2048):
    """x: (N, 1) float32. params: kernel-layout f32 (W, b) pairs (see init_params)."""
    N = x.shape[0]

    # Adapt the lane tile to the batch (don't burn MXU/EUP work on padding for
    # tiny batches); keep it a multiple of 256 (also a 128-multiple for v5e).
    tile_n = max(256, min(tile_n, _round_up(N, 256)))
    # Prefer >=2 grid tiles once the batch spans >=512 lanes so the "parallel"
    # grid axis can shard across both TensorCores on v7x.
    if _round_up(N, 256) >= 512 and pl.cdiv(N, tile_n) < 2:
        tile_n = _round_up(pl.cdiv(N, 2), 256)

    num_tiles = pl.cdiv(N, tile_n)
    padded_n = num_tiles * tile_n

    # Present the batch on the lane axis, zero-padded to a tile multiple.
    x_lane = jnp.pad(x.reshape(-1), (0, padded_n - N)).reshape(1, padded_n)

    # Pre-cast hidden-layer weights to bf16 for the MXU; biases stay f32.
    (w1, b1), (w2, b2), (w3, b3), (w4, b4), (w5, b5) = params
    flat_params = [
        w1, b1,
        w2.astype(jnp.bfloat16), b2,
        w3.astype(jnp.bfloat16), b3,
        w4.astype(jnp.bfloat16), b4,
        w5, b5,
    ]

    in_specs = [pl.BlockSpec((1, tile_n), lambda i: (0, i))]
    for p in flat_params:
        # Full-array blocks with a constant index map: DMA'd once, VMEM-resident.
        in_specs.append(pl.BlockSpec(p.shape, _const_idx))

    # Advisory cost estimate for XLA scheduling.
    flops_per_row = 2 * (1 * 64 + 64 * 128 + 128 * 256 + 256 * 128 + 128 * 1)
    trans_per_row = 64 + 128 + 256 + 128
    param_bytes = sum(int(p.size) * p.dtype.itemsize for p in flat_params)
    cost = pl.CostEstimate(
        flops=flops_per_row * padded_n,
        transcendentals=trans_per_row * padded_n,
        bytes_accessed=4 * 2 * padded_n + param_bytes,
    )

    out = pl.pallas_call(
        mlp_kernel,
        out_shape=jax.ShapeDtypeStruct((1, padded_n), x.dtype),
        grid_spec=pltpu.PrefetchScalarGridSpec(
            num_scalar_prefetch=0,
            grid=(num_tiles,),
            in_specs=in_specs,
            out_specs=pl.BlockSpec((1, tile_n), lambda i: (0, i)),
        ),
        compiler_params=pltpu.CompilerParams(
            dimension_semantics=("parallel",)),
        cost_estimate=cost,
    )(x_lane, *flat_params)

    return out[0, :N].reshape(N, 1)


def init_params(key):
    """Deterministic init mirroring nn.Linear default (uniform +-1/sqrt(fan_in)).

    Kernel layout: layers 1-4 store W as (out, in) and b as (out, 1);
    layer 5 stores W as (in, 1) and b as (1, 1) for the multiply+reduce path.
    """
    dims = [(1, 64), (64, 128), (128, 256), (256, 128), (128, 1)]
    params = []
    for idx, (fan_in, fan_out) in enumerate(dims):
        key, kw, kb = jax.random.split(key, 3)
        bound = 1.0 / (fan_in ** 0.5)
        w = jax.random.uniform(kw, (fan_out, fan_in), jnp.float32, -bound, bound)
        b = jax.random.uniform(kb, (fan_out, 1), jnp.float32, -bound, bound)
        if idx == len(dims) - 1:
            w = w.T                                            # (128, 1)
            b = b.T                                            # (1, 1)
        params.append((w, b))
    return params


def reference_forward(x, params):
    """Pure-JAX f32 reference in the standard (N, features) layout."""
    (w1, b1), (w2, b2), (w3, b3), (w4, b4), (w5, b5) = params
    h = jnp.tanh(x @ w1.T + b1.T)
    h = jnp.tanh(h @ w2.T + b2.T)
    h = jnp.tanh(h @ w3.T + b3.T)
    h = jnp.tanh(h @ w4.T + b4.T)
    return h @ w5 + b5                                          # w5: (128,1), b5: (1,1)


if __name__ == "__main__":
    key = jax.random.PRNGKey(0)
    kx, kp = jax.random.split(key)
    params = init_params(kp)

    # bf16 matmuls vs f32 reference -> relaxed tolerance (f32 accumulation kept).
    TOL = 5e-2

    # Small primary test (batch of 16, 1 feature — matches the module spec).
    # tile_n auto-shrinks to 256 lanes instead of padding to 2048.
    N = 16
    x = jax.random.normal(kx, (N, 1), jnp.float32)
    y = jax.block_until_ready(mlp_forward(x, params))
    y_ref = reference_forward(x, params)
    assert y.shape == (N, 1)
    assert jnp.allclose(y, y_ref, atol=TOL, rtol=TOL), "mismatch vs reference (N=16)"

    # Secondary test: non-divisible batch -> 2 grid tiles of 512 lanes
    # (exercises padding and the multi-tile / megacore path).
    N2 = 700
    x2 = jax.random.normal(kx, (N2, 1), jnp.float32)
    y2 = jax.block_until_ready(mlp_forward(x2, params))
    y2_ref = reference_forward(x2, params)
    assert y2.shape == (N2, 1)
    assert jnp.allclose(y2, y2_ref, atol=TOL, rtol=TOL), "mismatch vs reference (N=700)"

    print("KERNEL_OK")
</pallas_src>

<mosaic_0001>
module attributes {stable_mosaic.version = 11 : i64} {
  func.func @mlp_kernel(%arg0: i32, %arg1: memref<1x256xf32, #tpu.memory_space<vmem>>, %arg2: memref<64x1xf32, #tpu.memory_space<vmem>>, %arg3: memref<64x1xf32, #tpu.memory_space<vmem>>, %arg4: memref<128x64xbf16, #tpu.memory_space<vmem>>, %arg5: memref<128x1xf32, #tpu.memory_space<vmem>>, %arg6: memref<256x128xbf16, #tpu.memory_space<vmem>>, %arg7: memref<256x1xf32, #tpu.memory_space<vmem>>, %arg8: memref<128x256xbf16, #tpu.memory_space<vmem>>, %arg9: memref<128x1xf32, #tpu.memory_space<vmem>>, %arg10: memref<128x1xf32, #tpu.memory_space<vmem>>, %arg11: memref<1x1xf32, #tpu.memory_space<vmem>>, %arg12: memref<1x256xf32, #tpu.memory_space<vmem>>) attributes {dimension_semantics = [#tpu.dimension_semantics<parallel>], iteration_bounds = array<i64: 1>, scalar_prefetch = 0 : i64, scratch_operands = 0 : i64, tpu.core_type = #tpu.core_type<tc>, window_params = [{transform_indices = @transform_0, window_bounds = array<i64: 1, 256>}, {pipeline_mode = #tpu.pipeline_mode<synchronous>, transform_indices = @transform_1, window_bounds = array<i64: 64, 1>}, {pipeline_mode = #tpu.pipeline_mode<synchronous>, transform_indices = @transform_2, window_bounds = array<i64: 64, 1>}, {pipeline_mode = #tpu.pipeline_mode<synchronous>, transform_indices = @transform_3, window_bounds = array<i64: 128, 64>}, {pipeline_mode = #tpu.pipeline_mode<synchronous>, transform_indices = @transform_4, window_bounds = array<i64: 128, 1>}, {pipeline_mode = #tpu.pipeline_mode<synchronous>, transform_indices = @transform_5, window_bounds = array<i64: 256, 128>}, {pipeline_mode = #tpu.pipeline_mode<synchronous>, transform_indices = @transform_6, window_bounds = array<i64: 256, 1>}, {pipeline_mode = #tpu.pipeline_mode<synchronous>, transform_indices = @transform_7, window_bounds = array<i64: 128, 256>}, {pipeline_mode = #tpu.pipeline_mode<synchronous>, transform_indices = @transform_8, window_bounds = array<i64: 128, 1>}, {pipeline_mode = #tpu.pipeline_mode<synchronous>, transform_indices = @transform_9, window_bounds = array<i64: 128, 1>}, {pipeline_mode = #tpu.pipeline_mode<synchronous>, transform_indices = @transform_10, window_bounds = array<i64: 1, 1>}, {transform_indices = @transform_11, window_bounds = array<i64: 1, 256>}]} {
    %c0 = arith.constant 0 : index
    %c0_0 = arith.constant 0 : index
    %0 = vector.load %arg1[%c0, %c0_0] : memref<1x256xf32, #tpu.memory_space<vmem>>, vector<1x256xf32>
    %c0_1 = arith.constant 0 : index
    %c0_2 = arith.constant 0 : index
    %1 = vector.load %arg2[%c0_1, %c0_2] : memref<64x1xf32, #tpu.memory_space<vmem>>, vector<64x1xf32>
    %2 = vector.broadcast %1 : vector<64x1xf32> to vector<64x256xf32>
    %3 = vector.broadcast %0 : vector<1x256xf32> to vector<64x256xf32>
    %4 = arith.mulf %2, %3 : vector<64x256xf32>
    %c0_3 = arith.constant 0 : index
    %c0_4 = arith.constant 0 : index
    %5 = vector.load %arg3[%c0_3, %c0_4] : memref<64x1xf32, #tpu.memory_space<vmem>>, vector<64x1xf32>
    %6 = vector.broadcast %5 : vector<64x1xf32> to vector<64x256xf32>
    %7 = arith.addf %4, %6 : vector<64x256xf32>
    %8 = math.tanh %7 : vector<64x256xf32>
    %c0_5 = arith.constant 0 : index
    %c0_6 = arith.constant 0 : index
    %9 = vector.load %arg4[%c0_5, %c0_6] : memref<128x64xbf16, #tpu.memory_space<vmem>>, vector<128x64xbf16>
    %10 = arith.truncf %8 : vector<64x256xf32> to vector<64x256xbf16>
    %cst = arith.constant dense<0.000000e+00> : vector<128x256xf32>
    %11 = tpu.matmul %9, %10, %cst {dimension_numbers = #tpu.dot_dimension_numbers<[1], [0], [0], [1], [0, 0, 1, 1], [], []>} : vector<128x64xbf16>, vector<64x256xbf16>, vector<128x256xf32> -> vector<128x256xf32>
    %c0_7 = arith.constant 0 : index
    %c0_8 = arith.constant 0 : index
    %12 = vector.load %arg5[%c0_7, %c0_8] : memref<128x1xf32, #tpu.memory_space<vmem>>, vector<128x1xf32>
    %13 = vector.broadcast %12 : vector<128x1xf32> to vector<128x256xf32>
    %14 = arith.addf %11, %13 : vector<128x256xf32>
    %15 = math.tanh %14 : vector<128x256xf32>
    %c0_9 = arith.constant 0 : index
    %c0_10 = arith.constant 0 : index
    %16 = vector.load %arg6[%c0_9, %c0_10] : memref<256x128xbf16, #tpu.memory_space<vmem>>, vector<256x128xbf16>
    %17 = arith.truncf %15 : vector<128x256xf32> to vector<128x256xbf16>
    %cst_11 = arith.constant dense<0.000000e+00> : vector<256x256xf32>
    %18 = tpu.matmul %16, %17, %cst_11 {dimension_numbers = #tpu.dot_dimension_numbers<[1], [0], [0], [1], [0, 0, 1, 1], [], []>} : vector<256x128xbf16>, vector<128x256xbf16>, vector<256x256xf32> -> vector<256x256xf32>
    %c0_12 = arith.constant 0 : index
    %c0_13 = arith.constant 0 : index
    %19 = vector.load %arg7[%c0_12, %c0_13] : memref<256x1xf32, #tpu.memory_space<vmem>>, vector<256x1xf32>
    %20 = vector.broadcast %19 : vector<256x1xf32> to vector<256x256xf32>
    %21 = arith.addf %18, %20 : vector<256x256xf32>
    %22 = math.tanh %21 : vector<256x256xf32>
    %c0_14 = arith.constant 0 : index
    %c0_15 = arith.constant 0 : index
    %23 = vector.load %arg8[%c0_14, %c0_15] : memref<128x256xbf16, #tpu.memory_space<vmem>>, vector<128x256xbf16>
    %24 = arith.truncf %22 : vector<256x256xf32> to vector<256x256xbf16>
    %cst_16 = arith.constant dense<0.000000e+00> : vector<128x256xf32>
    %25 = tpu.matmul %23, %24, %cst_16 {dimension_numbers = #tpu.dot_dimension_numbers<[1], [0], [0], [1], [0, 0, 1, 1], [], []>} : vector<128x256xbf16>, vector<256x256xbf16>, vector<128x256xf32> -> vector<128x256xf32>
    %c0_17 = arith.constant 0 : index
    %c0_18 = arith.constant 0 : index
    %26 = vector.load %arg9[%c0_17, %c0_18] : memref<128x1xf32, #tpu.memory_space<vmem>>, vector<128x1xf32>
    %27 = vector.broadcast %26 : vector<128x1xf32> to vector<128x256xf32>
    %28 = arith.addf %25, %27 : vector<128x256xf32>
    %29 = math.tanh %28 : vector<128x256xf32>
    %c0_19 = arith.constant 0 : index
    %c0_20 = arith.constant 0 : index
    %30 = vector.load %arg10[%c0_19, %c0_20] : memref<128x1xf32, #tpu.memory_space<vmem>>, vector<128x1xf32>
    %31 = vector.broadcast %30 : vector<128x1xf32> to vector<128x256xf32>
    %32 = arith.mulf %31, %29 : vector<128x256xf32>
    %cst_21 = arith.constant dense<0.000000e+00> : vector<256xf32>
    %33 = vector.multi_reduction <add>, %32, %cst_21 [0] : vector<128x256xf32> to vector<256xf32>
    %34 = vector.shape_cast %33 : vector<256xf32> to vector<1x256xf32>
    %c0_22 = arith.constant 0 : index
    %c0_23 = arith.constant 0 : index
    %35 = vector.load %arg11[%c0_22, %c0_23] : memref<1x1xf32, #tpu.memory_space<vmem>>, vector<1x1xf32>
    %36 = vector.broadcast %35 : vector<1x1xf32> to vector<1x256xf32>
    %37 = arith.addf %34, %36 : vector<1x256xf32>
    %c0_24 = arith.constant 0 : index
    %c0_25 = arith.constant 0 : index
    %38 = vector.load %arg12[%c0_24, %c0_25] : memref<1x256xf32, #tpu.memory_space<vmem>>, vector<1x256xf32>
    tpu.vector_store %arg12[%c0_24, %c0_25], %37 {strides = array<i32>} : memref<1x256xf32, #tpu.memory_space<vmem>>, vector<1x256xf32>,
    return
  }
  func.func @transform_0(%arg0: i32) -> (i32, i32) {
    %c0_i32 = arith.constant 0 : i32
    %c0_i32_0 = arith.constant 0 : i32
    return %c0_i32, %arg0 : i32, i32
  }
  func.func @transform_1(%arg0: i32) -> (i32, i32) {
    %c0_i32 = arith.constant 0 : i32
    %c0_i32_0 = arith.constant 0 : i32
    %c0_i32_1 = arith.constant 0 : i32
    return %c0_i32, %c0_i32_0 : i32, i32
  }
  func.func @transform_2(%arg0: i32) -> (i32, i32) {
    %c0_i32 = arith.constant 0 : i32
    %c0_i32_0 = arith.constant 0 : i32
    %c0_i32_1 = arith.constant 0 : i32
    return %c0_i32, %c0_i32_0 : i32, i32
  }
  func.func @transform_3(%arg0: i32) -> (i32, i32) {
    %c0_i32 = arith.constant 0 : i32
    %c0_i32_0 = arith.constant 0 : i32
    %c0_i32_1 = arith.constant 0 : i32
    return %c0_i32, %c0_i32_0 : i32, i32
  }
  func.func @transform_4(%arg0: i32) -> (i32, i32) {
    %c0_i32 = arith.constant 0 : i32
    %c0_i32_0 = arith.constant 0 : i32
    %c0_i32_1 = arith.constant 0 : i32
    return %c0_i32, %c0_i32_0 : i32, i32
  }
  func.func @transform_5(%arg0: i32) -> (i32, i32) {
    %c0_i32 = arith.constant 0 : i32
    %c0_i32_0 = arith.constant 0 : i32
    %c0_i32_1 = arith.constant 0 : i32
    return %c0_i32, %c0_i32_0 : i32, i32
  }
  func.func @transform_6(%arg0: i32) -> (i32, i32) {
    %c0_i32 = arith.constant 0 : i32
    %c0_i32_0 = arith.constant 0 : i32
    %c0_i32_1 = arith.constant 0 : i32
    return %c0_i32, %c0_i32_0 : i32, i32
  }
  func.func @transform_7(%arg0: i32) -> (i32, i32) {
    %c0_i32 = arith.constant 0 : i32
    %c0_i32_0 = arith.constant 0 : i32
    %c0_i32_1 = arith.constant 0 : i32
    return %c0_i32, %c0_i32_0 : i32, i32
  }
  func.func @transform_8(%arg0: i32) -> (i32, i32) {
    %c0_i32 = arith.constant 0 : i32
    %c0_i32_0 = arith.constant 0 : i32
    %c0_i32_1 = arith.constant 0 : i32
    return %c0_i32, %c0_i32_0 : i32, i32
  }
  func.func @transform_9(%arg0: i32) -> (i32, i32) {
    %c0_i32 = arith.constant 0 : i32
    %c0_i32_0 = arith.constant 0 : i32
    %c0_i32_1 = arith.constant 0 : i32
    return %c0_i32, %c0_i32_0 : i32, i32
  }
  func.func @transform_10(%arg0: i32) -> (i32, i32) {
    %c0_i32 = arith.constant 0 : i32
    %c0_i32_0 = arith.constant 0 : i32
    %c0_i32_1 = arith.constant 0 : i32
    return %c0_i32, %c0_i32_0 : i32, i32
  }
  func.func @transform_11(%arg0: i32) -> (i32, i32) {
    %c0_i32 = arith.constant 0 : i32
    %c0_i32_0 = arith.constant 0 : i32
    return %c0_i32, %arg0 : i32, i32
  }
}

</mosaic_0001>

<bundles_post_ra>
// kernel: tpu_custom_call.1
= control target key start
LH: loop header
LB: loop body
LE: loop exit
PB: predicated region body
PF: predicated region fallthrough
CT: control target
= control target key end

     0   :  { %s3354_s0 = inlined_call_operand.vmem [shape: f32[1,256], index: 0, kind: input, shape index: {}]   ;;  %s3355_s1 = inlined_call_operand.vmem [shape: f32[64,1], index: 1, kind: input, shape index: {}]   ;;  %s3356_s2 = inlined_call_operand.vmem [shape: f32[64,1], index: 2, kind: input, shape index: {}]   ;;  %s3357_s3 = inlined_call_operand.vmem [shape: bf16[128,64], index: 3, kind: input, shape index: {}]   ;;  %s3358_s4 = inlined_call_operand.vmem [shape: f32[128,1], index: 4, kind: input, shape index: {}]   ;;  %s3359_s5 = inlined_call_operand.vmem [shape: bf16[256,128], index: 5, kind: input, shape index: {}]   ;;  %s3360_s6 = inlined_call_operand.vmem [shape: f32[256,1], index: 6, kind: input, shape index: {}]   ;;  %s3361_s7 = inlined_call_operand.vmem [shape: bf16[128,256], index: 7, kind: input, shape index: {}]   ;;  %s3362_s8 = inlined_call_operand.vmem [shape: f32[128,1], index: 8, kind: input, shape index: {}]   ;;  %s3363_s9 = inlined_call_operand.vmem [shape: f32[128,1], index: 9, kind: input, shape index: {}]   ;;  %s3364_s10 = inlined_call_operand.<no memory space> [shape: f32[1,1], index: 10, kind: input, shape index: {}]   ;;  %s3365_s11 = inlined_call_operand.hbm [shape: f32[1,256], index: 11, kind: output, shape index: {}]  }
   0x1   :  { %v16_v0 = vstv %s3364_s10 }
   0x2   :  { %17 = vst [vmem:[#allocation2] sm:$0x1] %v16_v0 }
   0x3   :  { %v118_v1 = vld [vmem:[%s3356_s2 + $0x30] sm:$0xff]  ;;  %v47_v3 = vld [vmem:[%s3355_s1 + $0x20] sm:$0xff]  ;;  %v2294_v4 = vmov 0  }
   0x4   :  { %v49_v2 = vld [vmem:[%s3355_s1 + $0x30] sm:$0xff]  ;;  %1979 = vset.pattern.permute.xlu2 %v2294_v4  ;;  %1978 = vset.pattern.permute.xlu1 %v2294_v4 }
   0x5   :  { %1977 = vset.pattern.permute.xlu0 %v2294_v4  ;;  %152 = vperm.xlu1 %1978, %v118_v1  }
   0x6   :  { %83 = vperm.xlu0 %1977, %v49_v2   ;;  %73 = vperm.xlu2 %1979, %v47_v3  }
   0x7   :  { %18 = vsyncpa [#allocation4], 0  ;;  %v119_v5 = vld [vmem:[%s3356_s2 + $0x38] sm:$0xff]  ;;  %v48_v7 = vld [vmem:[%s3355_s1 + $0x28] sm:$0xff]  ;;  %vm352_vm0 = vcmask 523264   ;;  %s1734_s10 = sshll.u32 %s3365_s11, 4  ;;  %s1735_s10 = int_to_ptr.hbm [resolvable:$true] %s1734_s10 }
   0x8   :  { %v50_v6 = vld [vmem:[%s3355_s1 + $0x38] sm:$0xff]  ;;  %v117_v8 = vld [vmem:[%s3356_s2 + $0x28] sm:$0xff]  ;;  %v116_v9 = vld [vmem:[%s3356_s2 + $0x20] sm:$0xff]  ;;  %vm1719_vm1 = vcmask 1040384  }
   0x9   :  { %v45_v10 = vld [vmem:[%s3355_s1 + $0x10] sm:$0xff]  ;;  %v46_v12 = vld [vmem:[%s3355_s1 + $0x18] sm:$0xff]  ;;  %v44_v14 = vld [vmem:[%s3355_s1 + $0x8] sm:$0xff] }
   0xa   :  { %v114_v11 = vld [vmem:[%s3356_s2 + $0x10] sm:$0xff]  ;;  %v115_v13 = vld [vmem:[%s3356_s2 + $0x18] sm:$0xff]  ;;  %v112_v15 = vld [vmem:[%s3356_s2] sm:$0xff] }
   0xb   :  { %v43_v16 = vld [vmem:[%s3355_s1] sm:$0xff]  ;;  %v230_v17 = vld [vmem:[%s3358_s4 + $0x70] sm:$0xff]  ;;  %v231_v18 = vld [vmem:[%s3358_s4 + $0x78] sm:$0xff] }
   0xc   :  { %v113_v19 = vld [vmem:[%s3356_s2 + $0x8] sm:$0xff]  ;;  %v226_v21 = vld [vmem:[%s3358_s4 + $0x50] sm:$0xff]  ;;  %v228_v22 = vld [vmem:[%s3358_s4 + $0x60] sm:$0xff] }
   0xd   :  { %157 = vperm.xlu1 %1978, %v119_v5   ;;  %v229_v20 = vld [vmem:[%s3358_s4 + $0x68] sm:$0xff]  ;;  %v224_v23 = vld [vmem:[%s3358_s4 + $0x40] sm:$0xff]  ;;  %v227_v25 = vld [vmem:[%s3358_s4 + $0x58] sm:$0xff] }
   0xe   :  { %88 = vperm.xlu0 %1977, %v50_v6   ;;  %78 = vperm.xlu2 %1979, %v48_v7   ;;  %v225_v24 = vld [vmem:[%s3358_s4 + $0x48] sm:$0xff]  ;;  %v223_v26 = vld [vmem:[%s3358_s4 + $0x38] sm:$0xff]  ;;  %v220_v27 = vld [vmem:[%s3358_s4 + $0x20] sm:$0xff] }
   0xf   :  { %v222_v28 = vld [vmem:[%s3358_s4 + $0x30] sm:$0xff]  ;;  %v219_v30 = vld [vmem:[%s3358_s4 + $0x18] sm:$0xff]  ;;  %v221_v31 = vld [vmem:[%s3358_s4 + $0x28] sm:$0xff] }
  0x10   :  { %v218_v29 = vld [vmem:[%s3358_s4 + $0x10] sm:$0xff]  ;;  %v217_v32 = vld [vmem:[%s3358_s4 + $0x8] sm:$0xff]  ;;  %v216_v34 = vld [vmem:[%s3358_s4] sm:$0xff] }
  0x11   :  { %v585_v33 = vld [vmem:[%s3360_s6 + $0xf0] sm:$0xff]  ;;  %v583_v35 = vld [vmem:[%s3360_s6 + $0xe0] sm:$0xff]  ;;  %v584_v36 = vld [vmem:[%s3360_s6 + $0xe8] sm:$0xff] }
  0x12   :  { %v586_v37 = vld [vmem:[%s3360_s6 + $0xf8] sm:$0xff]  ;;  %v579_v39 = vld [vmem:[%s3360_s6 + $0xc0] sm:$0xff]  ;;  %v581_v40 = vld [vmem:[%s3360_s6 + $0xd0] sm:$0xff] }
  0x13   :  { %v582_v38 = vld [vmem:[%s3360_s6 + $0xd8] sm:$0xff]  ;;  %v569_v41 = vld [vmem:[%s3360_s6 + $0x70] sm:$0xff]  ;;  %v580_v43 = vld [vmem:[%s3360_s6 + $0xc8] sm:$0xff] }
  0x14   :  { %v570_v42 = vld [vmem:[%s3360_s6 + $0x78] sm:$0xff]  ;;  %v567_v45 = vld [vmem:[%s3360_s6 + $0x60] sm:$0xff]  ;;  %v577_v46 = vld [vmem:[%s3360_s6 + $0xb0] sm:$0xff] }
  0x15   :  { %147 = vperm.xlu1 %1978, %v117_v8   ;;  %v578_v44 = vld [vmem:[%s3360_s6 + $0xb8] sm:$0xff]  ;;  %v42_v48 = vld [vmem:[%s3354_s0] sm:$0x3]  ;;  %v576_v55 = vld [vmem:[%s3360_s6 + $0xa8] sm:$0xff] }
  0x16   :  { %142 = vperm.xlu0 %1977, %v116_v9   ;;  %63 = vperm.xlu2 %1979, %v45_v10   ;;  %v2497_v49 = vperm.slane %v42_v48, 0  ;;  %v2499_v51 = vperm.slane %v42_v48, 1  ;;  %v575_v53 = vld [vmem:[%s3360_s6 + $0xa0] sm:$0xff]  ;;  %v568_v56 = vld [vmem:[%s3360_s6 + $0x68] sm:$0xff]  ;;  %v566_v1 = vld [vmem:[%s3360_s6 + $0x58] sm:$0xff] }
  0x17   :  { %v573_v4 = vld [vmem:[%s3360_s6 + $0x90] sm:$0xff] }
  0x18   :  { %v565_v5 = vld [vmem:[%s3360_s6 + $0x50] sm:$0xff] }
  0x1d   :  { %132 = vperm.xlu1 %1978, %v114_v11  }
  0x1e   :  { %68 = vperm.xlu0 %1977, %v46_v12   ;;  %137 = vperm.xlu2 %1979, %v115_v13  }
  0x25   :  { %58 = vperm.xlu1 %1978, %v44_v14  }
  0x26   :  { %122 = vperm.xlu2 %1979, %v112_v15   ;;  %53 = vperm.xlu0 %1977, %v43_v16  }
  0x2d   :  { %304 = vperm.xlu1 %1978, %v230_v17  }
  0x2e   :  { %309 = vperm.xlu2 %1979, %v231_v18   ;;  %127 = vperm.xlu0 %1977, %v113_v19   ;;  %v563_v19 = vld [vmem:[%s3360_s6 + $0x40] sm:$0xff] }
  0x35   :  { %299 = vperm.xlu1 %1978, %v229_v20  }
  0x36   :  { %284 = vperm.xlu2 %1979, %v226_v21   ;;  %294 = vperm.xlu0 %1977, %v228_v22   ;;  %v564_v21 = vld [vmem:[%s3360_s6 + $0x48] sm:$0xff]  ;;  %v574_v22 = vld [vmem:[%s3360_s6 + $0x98] sm:$0xff] }
  0x3d   :  { %274 = vperm.xlu1 %1978, %v224_v23  }
  0x3e   :  { %279 = vperm.xlu2 %1979, %v225_v24   ;;  %289 = vperm.xlu0 %1977, %v227_v25  }
  0x45   :  { %269 = vperm.xlu1 %1978, %v223_v26  }
  0x46   :  { %254 = vperm.xlu2 %1979, %v220_v27   ;;  %264 = vperm.xlu0 %1977, %v222_v28  }
  0x4d   :  { %244 = vperm.xlu1 %1978, %v218_v29  }
  0x4e   :  { %249 = vperm.xlu2 %1979, %v219_v30   ;;  %259 = vperm.xlu0 %1977, %v221_v31  }
  0x55   :  { %239 = vperm.xlu1 %1978, %v217_v32  }
  0x56   :  { %739 = vperm.xlu2 %1979, %v585_v33   ;;  %234 = vperm.xlu0 %1977, %v216_v34  }
  0x5d   :  { %729 = vperm.xlu1 %1978, %v583_v35  }
  0x5e   :  { %734 = vperm.xlu2 %1979, %v584_v36   ;;  %744 = vperm.xlu0 %1977, %v586_v37  }
  0x60   :  { %v74_v47 = vpop.permute.xlu2 %73 }
  0x61   :  { %v104_v8 = vmul.f32 %v2497_v49, %v74_v47  ;;  %v105_v9 = vmul.f32 %v2499_v51, %v74_v47 }
  0x65   :  { %724 = vperm.xlu1 %1978, %v582_v38  }
  0x66   :  { %709 = vperm.xlu2 %1979, %v579_v39   ;;  %719 = vperm.xlu0 %1977, %v581_v40  }
  0x68   :  { %v79_v58 = vpop.permute.xlu2 %78 }
  0x69   :  { %v106_v6 = vmul.f32 %v2497_v49, %v79_v58  ;;  %v107_v7 = vmul.f32 %v2499_v51, %v79_v58  ;;  %v559_v58 = vld [vmem:[%s3360_s6 + $0x20] sm:$0xff] }
  0x6d   :  { %659 = vperm.xlu1 %1978, %v569_v41  }
  0x6e   :  { %664 = vperm.xlu2 %1979, %v570_v42   ;;  %714 = vperm.xlu0 %1977, %v580_v43   ;;  %v561_v43 = vld [vmem:[%s3360_s6 + $0x30] sm:$0xff] }
  0x70   :  { %v64_v11 = vpop.permute.xlu2 %63 }
  0x71   :  { %v100_v26 = vmul.f32 %v2497_v49, %v64_v11  ;;  %v101_v27 = vmul.f32 %v2499_v51, %v64_v11 }
  0x75   :  { %704 = vperm.xlu1 %1978, %v578_v44   ;;  %v572_v44 = vld [vmem:[%s3360_s6 + $0x88] sm:$0xff] }
  0x76   :  { %649 = vperm.xlu2 %1979, %v567_v45   ;;  %699 = vperm.xlu0 %1977, %v577_v46   ;;  %v571_v45 = vld [vmem:[%s3360_s6 + $0x80] sm:$0xff] }
  0x77   :  { %v153_v50 = vpop.permute.xlu1 %152 }
  0x78   :  { %v84_v52 = vpop.permute.xlu0 %83  ;;  %v138_v37 = vpop.permute.xlu2 %137 }
  0x79   :  { %v108_v54 = vmul.f32 %v2497_v49, %v84_v52  ;;  %v109_v57 = vmul.f32 %v2499_v51, %v84_v52 }
  0x7b   :  { %v172_v59 = vadd.f32 %v153_v50, %v108_v54  ;;  %v173_v61 = vadd.f32 %v153_v50, %v109_v57  ;;  %v560_v57 = vld [vmem:[%s3360_s6 + $0x28] sm:$0xff] }
  0x7d   :  { %689 = vperm.xlu1 %1978, %v575_v53   ;;  %1980 = vtanh.f32 %v172_v59 }
  0x7e   :  { %694 = vperm.xlu2 %1979, %v576_v55   ;;  %654 = vperm.xlu0 %1977, %v568_v56   ;;  %1982 = vtanh.f32 %v173_v61  ;;  %v562_v61 = vld [vmem:[%s3360_s6 + $0x38] sm:$0xff] }
  0x7f   :  { %v158_v60 = vpop.permute.xlu1 %157 }
  0x80   :  { %v89_v62 = vpop.permute.xlu0 %88  ;;  %v123_v55 = vpop.permute.xlu2 %122 }
  0x81   :  { %v110_v63 = vmul.f32 %v2497_v49, %v89_v62  ;;  %v111_v0 = vmul.f32 %v2499_v51, %v89_v62 }
  0x83   :  { %v174_v2 = vadd.f32 %v158_v60, %v110_v63  ;;  %v175_v3 = vadd.f32 %v158_v60, %v111_v0  ;;  %v1981_v15 = vpop.eup %1980 }
  0x84   :  { %v1983_v18 = vpop.eup %1982 }
  0x85   :  { %1984 = vtanh.f32 %v174_v2  ;;  %644 = vperm.xlu1 %1978, %v566_v1  }
  0x86   :  { %1986 = vtanh.f32 %v175_v3  ;;  %679 = vperm.xlu2 %1979, %v573_v4   ;;  %639 = vperm.xlu0 %1977, %v565_v5   ;;  %v555_v5 = vld [vmem:[%s3360_s6] sm:$0xff] }
  0x87   :  { %v148_v10 = vpop.permute.xlu1 %147 }
  0x88   :  { %v170_v12 = vadd.f32 %v148_v10, %v106_v6  ;;  %v171_v13 = vadd.f32 %v148_v10, %v107_v7  ;;  %v143_v14 = vpop.permute.xlu0 %142 }
  0x89   :  { %v168_v16 = vadd.f32 %v143_v14, %v104_v8  ;;  %v169_v17 = vadd.f32 %v143_v14, %v105_v9  ;;  %v1919_v14 = vld [vmem:[%s3357_s3] sm:$0xff] }
  0x8a   :  { %1988 = vtanh.f32 %v170_v12  ;;  %v1134_v12 = vld [vmem:[%s3362_s8 + $0x8] sm:$0xff] }
  0x8b   :  { %v1985_v20 = vpop.eup %1984  ;;  %1990 = vtanh.f32 %v171_v13  ;;  %v1133_v13 = vld [vmem:[%s3362_s8] sm:$0xff] }
  0x8c   :  { %v1987_v23 = vpop.eup %1986  ;;  %1992 = vtanh.f32 %v168_v16  ;;  %v214_v24 = vpack.c.bf16 %v1985_v20, %v1981_v15  ;;  %v556_v15 = vld [vmem:[%s3360_s6 + $0x8] sm:$0xff]  ;;  %v1135_v20 = vld [vmem:[%s3362_s8 + $0x10] sm:$0xff] }
  0x8d   :  { %1994 = vtanh.f32 %v169_v17  ;;  %629 = vperm.xlu1 %1978, %v563_v19   ;;  %v215_v25 = vpack.c.bf16 %v1987_v23, %v1983_v18  ;;  %v1924_v16 = vld [vmem:[%s3357_s3 + $0x28] sm:$0xff]  ;;  %v2589_v17 = vld [vmem:[%s3357_s3 + $0x20] sm:$0xff]  ;;  %v1136_v19 = vld [vmem:[%s3362_s8 + $0x18] sm:$0xff] }
  0x8e   :  { %634 = vperm.xlu2 %1979, %v564_v21   ;;  %684 = vperm.xlu0 %1977, %v574_v22   ;;  %v1137_v18 = vld [vmem:[%s3362_s8 + $0x20] sm:$0xff]  ;;  %v1140_v21 = vld [vmem:[%s3362_s8 + $0x38] sm:$0xff]  ;;  %v1139_v22 = vld [vmem:[%s3362_s8 + $0x30] sm:$0xff] }
  0x8f   :  { %381 = vmatpush.bf16.msra.mxu0 %v214_v24  ;;  %1959 = vmatpush.bf16.msra.mxu2 %v214_v24  ;;  %v133_v28 = vpop.permute.xlu1 %132  ;;  %v1920_v23 = vld [vmem:[%s3357_s3 + $0x8] sm:$0xff] }
  0x90   :  { %v1989_v29 = vpop.eup %1988  ;;  %430 = vmatpush.bf16.msra.mxu1 %v215_v25  ;;  %1963 = vmatpush.bf16.msra.mxu3 %v215_v25  ;;  %v164_v30 = vadd.f32 %v133_v28, %v100_v26  ;;  %v165_v31 = vadd.f32 %v133_v28, %v101_v27  ;;  %v69_v32 = vpop.permute.xlu0 %68  ;;  %v1138_v24 = vld [vmem:[%s3362_s8 + $0x28] sm:$0xff]  ;;  %v1925_v25 = vld [vmem:[%s3357_s3 + $0x30] sm:$0xff]  ;;  %v1141_v28 = vld [vmem:[%s3362_s8 + $0x40] sm:$0xff] }
  0x91   :  { %v1991_v33 = vpop.eup %1990  ;;  %v102_v34 = vmul.f32 %v2497_v49, %v69_v32  ;;  %v103_v35 = vmul.f32 %v2499_v51, %v69_v32  ;;  %v1143_v26 = vld [vmem:[%s3362_s8 + $0x50] sm:$0xff]  ;;  %v1142_v27 = vld [vmem:[%s3362_s8 + $0x48] sm:$0xff]  ;;  %v1144_v32 = vld [vmem:[%s3362_s8 + $0x58] sm:$0xff] }
  0x92   :  { %v1993_v36 = vpop.eup %1992  ;;  %1996 = vtanh.f32 %v164_v30  ;;  %v1145_v30 = vld [vmem:[%s3362_s8 + $0x60] sm:$0xff] }
  0x93   :  { %v1995_v38 = vpop.eup %1994  ;;  %v166_v39 = vadd.f32 %v138_v37, %v102_v34  ;;  %v167_v40 = vadd.f32 %v138_v37, %v103_v35  ;;  %v212_v41 = vpack.c.bf16 %v1989_v29, %v1993_v36  ;;  %1998 = vtanh.f32 %v165_v31  ;;  %v1146_v29 = vld [vmem:[%s3362_s8 + $0x68] sm:$0xff]  ;;  %v1921_v31 = vld [vmem:[%s3357_s3 + $0x10] sm:$0xff]  ;;  %v1537_v34 = vld [vmem:[%s3363_s9] sm:$0xff] }
  0x94   :  { %v213_v42 = vpack.c.bf16 %v1991_v33, %v1995_v38  ;;  %v1926_v33 = vld [vmem:[%s3357_s3 + $0x38] sm:$0xff]  ;;  %v1147_v36 = vld [vmem:[%s3362_s8 + $0x70] sm:$0xff] }
  0x95   :  { %2000 = vtanh.f32 %v166_v39  ;;  %382 = vmatpush.bf16.msra.mxu0 %v212_v41  ;;  %1960 = vmatpush.bf16.msra.mxu2 %v212_v41  ;;  %v1148_v35 = vld [vmem:[%s3362_s8 + $0x78] sm:$0xff]  ;;  %v1539_v38 = vld [vmem:[%s3363_s9 + $0x10] sm:$0xff] }
  0x96   :  { %2002 = vtanh.f32 %v167_v40  ;;  %431 = vmatpush.bf16.msra.mxu1 %v213_v42  ;;  %1964 = vmatpush.bf16.msra.mxu3 %v213_v42  ;;  %v1540_v37 = vld [vmem:[%s3363_s9 + $0x18] sm:$0xff]  ;;  %v1538_v40 = vld [vmem:[%s3363_s9 + $0x8] sm:$0xff]  ;;  %v1543_v41 = vld [vmem:[%s3363_s9 + $0x30] sm:$0xff] }
  0x97   :  { %619 = vperm.xlu2 %1979, %v561_v43   ;;  %674 = vperm.xlu1 %1978, %v572_v44   ;;  %v59_v56 = vpop.permute.xlu1 %58  ;;  %v1922_v39 = vld [vmem:[%s3357_s3 + $0x18] sm:$0xff]  ;;  %v1542_v42 = vld [vmem:[%s3363_s9 + $0x28] sm:$0xff]  ;;  %v1541_v43 = vld [vmem:[%s3363_s9 + $0x20] sm:$0xff] }
  0x98   :  { %669 = vperm.xlu0 %1977, %v571_v45   ;;  %v54_v46 = vpop.permute.xlu0 %53  ;;  %v1997_v47 = vpop.eup %1996  ;;  %v98_v0 = vmul.f32 %v2497_v49, %v59_v56  ;;  %v99_v1 = vmul.f32 %v2499_v51, %v59_v56  ;;  %v1546_v44 = vld [vmem:[%s3363_s9 + $0x48] sm:$0xff]  ;;  %v1545_v45 = vld [vmem:[%s3363_s9 + $0x40] sm:$0xff] }
  0x99   :  { %v96_v48 = vmul.f32 %v2497_v49, %v54_v46  ;;  %v1999_v50 = vpop.eup %1998  ;;  %v97_v52 = vmul.f32 %v2499_v51, %v54_v46  ;;  %v558_v49 = vld [vmem:[%s3360_s6 + $0x18] sm:$0xff]  ;;  %v557_v51 = vld [vmem:[%s3360_s6 + $0x10] sm:$0xff] }
  0x9a   :  { %v1544_v46 = vld [vmem:[%s3363_s9 + $0x38] sm:$0xff] }
  0x9b   :  { %v2001_v53 = vpop.eup %2000  ;;  %v160_v60 = vadd.f32 %v123_v55, %v96_v48  ;;  %v161_v63 = vadd.f32 %v123_v55, %v97_v52  ;;  %v1548_v48 = vld [vmem:[%s3363_s9 + $0x58] sm:$0xff]  ;;  %v1707_v55 = vld [vmem:[#allocation2] sm:$0x1] }
  0x9c   :  { %v2003_v54 = vpop.eup %2002  ;;  %v210_v59 = vpack.c.bf16 %v2001_v53, %v1997_v47  ;;  %v1549_v47 = vld [vmem:[%s3363_s9 + $0x60] sm:$0xff]  ;;  %v1552_v52 = vld [vmem:[%s3363_s9 + $0x78] sm:$0xff]  ;;  %v1551_v53 = vld [vmem:[%s3363_s9 + $0x70] sm:$0xff] }
  0x9d   :  { %v211_v62 = vpack.c.bf16 %v2003_v54, %v1999_v50  ;;  %2004 = vtanh.f32 %v160_v60  ;;  %v1547_v50 = vld [vmem:[%s3363_s9 + $0x50] sm:$0xff]  ;;  %v1550_v54 = vld [vmem:[%s3363_s9 + $0x68] sm:$0xff] }
  0x9e   :  { %383 = vmatpush.bf16.msra.mxu0 %v210_v59  ;;  %1961 = vmatpush.bf16.msra.mxu2 %v210_v59  ;;  %2006 = vtanh.f32 %v161_v63 }
  0x9f   :  { %614 = vperm.xlu2 %1979, %v560_v57   ;;  %609 = vperm.xlu1 %1978, %v559_v58  }
  0xa0   :  { %624 = vperm.xlu0 %1977, %v562_v61   ;;  %432 = vmatpush.bf16.msra.mxu1 %v211_v62  ;;  %v128_v2 = vpop.permute.xlu0 %127 }
  0xa1   :  { %1965 = vmatpush.bf16.msra.mxu3 %v211_v62  ;;  %v162_v3 = vadd.f32 %v128_v2, %v98_v0  ;;  %v163_v4 = vadd.f32 %v128_v2, %v99_v1 }
  0xa3   :  { %2008 = vtanh.f32 %v162_v3  ;;  %v2005_v6 = vpop.eup %2004 }
  0xa4   :  { %2010 = vtanh.f32 %v163_v4  ;;  %v2007_v7 = vpop.eup %2006 }
  0xa7   :  { %589 = vperm.xlu2 %1979, %v555_v5   ;;  %604 = vperm.xlu1 %1978, %v558_v49  }
  0xa8   :  { %599 = vperm.xlu0 %1977, %v557_v51  }
  0xa9   :  { %v2009_v8 = vpop.eup %2008 }
  0xaa   :  { %v2011_v9 = vpop.eup %2010  ;;  %v208_v10 = vpack.c.bf16 %v2009_v8, %v2005_v6  ;;  %v305_v6 = vpop.permute.xlu1 %304 }
  0xab   :  { %v209_v11 = vpack.c.bf16 %v2011_v9, %v2007_v7  ;;  %v310_v8 = vpop.permute.xlu2 %309 }
  0xac   :  { %384 = vmatpush.bf16.msra.mxu0 %v208_v10  ;;  %1962 = vmatpush.bf16.msra.mxu2 %v208_v10 }
  0xad   :  { %433 = vmatpush.bf16.msra.mxu1 %v209_v11  ;;  %1966 = vmatpush.bf16.msra.mxu3 %v209_v11 }
  0xaf   :  { %1156 = vperm.xlu2 %1979, %v1134_v12   ;;  %1151 = vperm.xlu1 %1978, %v1133_v13   ;;  %v295_v12 = vpop.permute.xlu0 %294 }
  0xb0   :  { %594 = vperm.xlu0 %1977, %v556_v15   ;;  %1775 = vmatmul.msk.bf16.vlgmr.msra.gmra.mxu0 %vm352_vm0, %v1919_v14 }
  0xb1   :  { %1780 = vmatmul.msk.bf16.vlgmr.msra.gmra.mxu2 %vm352_vm0, %v1924_v16  ;;  %1783 = vmatmul.msk.bf16.vlgmr.msra.gmra.mxu1 %vm352_vm0, %v1919_v14 }
  0xb2   :  { %1787 = vmatmul.msk.bf16.vlgmr.msra.gmra.mxu3 %vm352_vm0, %v2589_v17  ;;  %v300_v13 = vpop.permute.xlu1 %299 }
  0xb7   :  { %1171 = vperm.xlu2 %1979, %v1137_v18   ;;  %1166 = vperm.xlu1 %1978, %v1136_v19  }
  0xb8   :  { %1161 = vperm.xlu0 %1977, %v1135_v20  }
  0xbf   :  { %1186 = vperm.xlu2 %1979, %v1140_v21   ;;  %1181 = vperm.xlu1 %1978, %v1139_v22   ;;  %v285_v21 = vpop.permute.xlu2 %284 }
  0xc0   :  { %1176 = vperm.xlu0 %1977, %v1138_v24   ;;  %1776 = vmatmul.msk.bf16.gmra.mxu0 %vm352_vm0, %v1920_v23 }
  0xc1   :  { %1781 = vmatmul.msk.bf16.gmra.mxu2 %vm352_vm0, %v1925_v25  ;;  %1784 = vmatmul.msk.bf16.gmra.mxu1 %vm352_vm0, %v1920_v23  ;;  %v290_v23 = vpop.permute.xlu0 %289 }
  0xc2   :  { %1788 = vmatmul.msk.bf16.gmra.mxu3 %vm352_vm0, %v1924_v16 }
  0xc7   :  { %1201 = vperm.xlu2 %1979, %v1143_v26   ;;  %1196 = vperm.xlu1 %1978, %v1142_v27  }
  0xc8   :  { %1191 = vperm.xlu0 %1977, %v1141_v28  }
  0xcf   :  { %1216 = vperm.xlu2 %1979, %v1146_v29   ;;  %1211 = vperm.xlu1 %1978, %v1145_v30  }
  0xd0   :  { %1206 = vperm.xlu0 %1977, %v1144_v32   ;;  %1777 = vmatmul.msk.bf16.gmra.mxu0 %vm352_vm0, %v1921_v31 }
  0xd1   :  { %1782 = vmatmul.msk.bf16.gmra.mxu2 %vm352_vm0, %v1926_v33  ;;  %1785 = vmatmul.msk.bf16.gmra.mxu1 %vm352_vm0, %v1921_v31 }
  0xd2   :  { %1789 = vmatmul.msk.bf16.gmra.mxu3 %vm352_vm0, %v1925_v25  ;;  %v275_v25 = vpop.permute.xlu1 %274 }
  0xd7   :  { %1555 = vperm.xlu2 %1979, %v1537_v34   ;;  %1226 = vperm.xlu1 %1978, %v1148_v35   ;;  %v280_v34 = vpop.permute.xlu2 %279 }
  0xd8   :  { %1221 = vperm.xlu0 %1977, %v1147_v36  }
  0xdf   :  { %1570 = vperm.xlu2 %1979, %v1540_v37   ;;  %1565 = vperm.xlu1 %1978, %v1539_v38  }
  0xe0   :  { %1560 = vperm.xlu0 %1977, %v1538_v40   ;;  %1778 = vmatmul.msk.bf16.gmra.mxu0 %vm352_vm0, %v1922_v39 }
  0xe1   :  { %1786 = vmatmul.msk.bf16.gmra.mxu1 %vm352_vm0, %v1922_v39  ;;  %v270_v39 = vpop.permute.xlu1 %269 }
  0xe2   :  { %1790 = vmatmul.msk.bf16.gmra.mxu3 %vm352_vm0, %v1926_v33 }
  0xe7   :  { %1585 = vperm.xlu2 %1979, %v1543_v41   ;;  %1580 = vperm.xlu1 %1978, %v1542_v42  }
  0xe8   :  { %1575 = vperm.xlu0 %1977, %v1541_v43  }
  0xef   :  { %1600 = vperm.xlu2 %1979, %v1546_v44   ;;  %1595 = vperm.xlu1 %1978, %v1545_v45   ;;  %v265_v44 = vpop.permute.xlu0 %264 }
  0xf0   :  { %1590 = vperm.xlu0 %1977, %v1544_v46   ;;  %1779 = vmatmul.msk.bf16.gmra.mxu0 %vm352_vm0, %v2589_v17 }
  0xf7   :  { %1615 = vperm.xlu2 %1979, %v1549_v47   ;;  %1610 = vperm.xlu1 %1978, %v1548_v48  }
  0xf8   :  { %1605 = vperm.xlu0 %1977, %v1547_v50  }
  0xff   :  { %1630 = vperm.xlu2 %1979, %v1552_v52   ;;  %1625 = vperm.xlu1 %1978, %v1551_v53   ;;  %v255_v52 = vpop.permute.xlu2 %254 }
 0x100   :  { %1620 = vperm.xlu0 %1977, %v1550_v54  }
 0x108   :  { %1710 = vperm.xlu0 %1977, %v1707_v55  }
 0x12d   :  { %v2714_v56 = vpop.f32.mrf.mxu0 }
 0x12e   :  { %v2716_v57 = vpop.f32.mrf.mxu1 }
 0x134   :  { %v411_v58 = vpop.f32.mrf.mxu2 }
 0x135   :  { %v2718_v59 = vpop.f32.mrf.mxu3  ;;  %v2720_v60 = vpop.f32.mrf.mxu0  ;;  %v412_v27 = vadd.f32 %v411_v58, %v285_v21 }
 0x136   :  { %v2722_v61 = vpop.f32.mrf.mxu1 }
 0x13c   :  { %v413_v62 = vpop.f32.mrf.mxu2 }
 0x13d   :  { %v2724_v63 = vpop.f32.mrf.mxu3  ;;  %v2726_v0 = vpop.f32.mrf.mxu0  ;;  %v414_v24 = vadd.f32 %v413_v62, %v290_v23 }
 0x13e   :  { %v2728_v1 = vpop.f32.mrf.mxu1  ;;  %v458_v58 = vadd.f32 %v2724_v63, %v280_v34 }
 0x144   :  { %v416_v2 = vpop.f32.mrf.mxu2 }
 0x145   :  { %v460_v3 = vpop.f32.mrf.mxu3  ;;  %v2730_v4 = vpop.f32.mrf.mxu0  ;;  %v417_v22 = vadd.f32 %v416_v2, %v295_v12 }
 0x146   :  { %v2734_v7 = vpop.f32.mrf.mxu1  ;;  %v461_v50 = vadd.f32 %v460_v3, %v285_v21  ;;  %v250_v21 = vpop.permute.xlu2 %249 }
 0x14c   :  { %v418_v5 = vpop.f32.mrf.mxu2 }
 0x14d   :  { %v462_v49 = vpop.f32.mrf.mxu3  ;;  %v2732_v51 = vpop.f32.mrf.mxu0  ;;  %v419_v17 = vadd.f32 %v418_v5, %v300_v13 }
 0x14e   :  { %v2738_v14 = vpop.f32.mrf.mxu1  ;;  %v463_v53 = vadd.f32 %v462_v49, %v290_v23  ;;  %v245_v5 = vpop.permute.xlu1 %244 }
 0x14f   :  { %v260_v49 = vpop.permute.xlu0 %259 }
 0x154   :  { %v421_v9 = vpop.f32.mrf.mxu2 }
 0x155   :  { %v465_v10 = vpop.f32.mrf.mxu3  ;;  %v2736_v11 = vpop.f32.mrf.mxu0  ;;  %v422_v15 = vadd.f32 %v421_v9, %v305_v6  ;;  %v456_v9 = vadd.f32 %v2718_v59, %v275_v25 }
 0x156   :  { %v2740_v26 = vpop.f32.mrf.mxu1  ;;  %v466_v48 = vadd.f32 %v465_v10, %v295_v12 }
 0x157   :  { %2012 = vtanh.f32 %v422_v15  ;;  %v399_v15 = vadd.f32 %v2736_v11, %v260_v49  ;;  %v448_v11 = vadd.f32 %v2740_v26, %v260_v49  ;;  %v235_v26 = vpop.permute.xlu0 %234  ;;  %v1931_v49 = vld [vmem:[%s3359_s5 + $0x20] sm:$0xff] }
 0x15c   :  { %v423_v16 = vpop.f32.mrf.mxu2 }
 0x15d   :  { %v424_v18 = vadd.f32 %v423_v16, %v310_v8  ;;  %v467_v19 = vpop.f32.mrf.mxu3  ;;  %v401_v20 = vpop.f32.mrf.mxu0 }
 0x15e   :  { %v2013_v28 = vpop.eup %2012  ;;  %v450_v40 = vpop.f32.mrf.mxu1  ;;  %v468_v45 = vadd.f32 %v467_v19, %v300_v13  ;;  %v402_v13 = vadd.f32 %v401_v20, %v265_v44  ;;  %v394_v20 = vadd.f32 %v2730_v4, %v250_v21 }
 0x15f   :  { %2014 = vtanh.f32 %v424_v18  ;;  %v397_v18 = vadd.f32 %v2732_v51, %v255_v52 }
 0x160   :  { %2016 = vtanh.f32 %v419_v17 }
 0x161   :  { %2018 = vtanh.f32 %v417_v22  ;;  %v451_v22 = vadd.f32 %v450_v40, %v265_v44 }
 0x162   :  { %2020 = vtanh.f32 %v414_v24 }
 0x163   :  { %2022 = vtanh.f32 %v412_v27  ;;  %v392_v27 = vadd.f32 %v2726_v0, %v245_v5 }
 0x165   :  { %v2015_v29 = vpop.eup %2014  ;;  %v470_v30 = vpop.f32.mrf.mxu3 }
 0x166   :  { %v403_v31 = vpop.f32.mrf.mxu0  ;;  %v553_v32 = vpack.c.bf16 %v2015_v29, %v2013_v28  ;;  %v2017_v33 = vpop.eup %2016  ;;  %v471_v38 = vadd.f32 %v470_v30, %v305_v6 }
 0x167   :  { %v2019_v35 = vpop.eup %2018  ;;  %v404_v6 = vadd.f32 %v403_v31, %v270_v39  ;;  %v452_v10 = vpop.f32.mrf.mxu1  ;;  %v446_v31 = vadd.f32 %v2738_v14, %v255_v52  ;;  %v441_v14 = vadd.f32 %v2728_v1, %v245_v5 }
 0x168   :  { %843 = vmatpush.bf16.msrb.mxu2 %v553_v32  ;;  %v551_v36 = vpack.c.bf16 %v2017_v33, %v2019_v35  ;;  %v2021_v37 = vpop.eup %2020  ;;  %2024 = vtanh.f32 %v471_v38  ;;  %v453_v16 = vadd.f32 %v452_v10, %v270_v39  ;;  %v240_v30 = vpop.permute.xlu1 %239  ;;  %v387_v35 = vadd.f32 %v2714_v56, %v235_v26 }
 0x169   :  { %v2023_v41 = vpop.eup %2022  ;;  %v389_v4 = vadd.f32 %v2720_v60, %v240_v30  ;;  %v438_v40 = vadd.f32 %v2722_v61, %v240_v30  ;;  %v2765_v5 = vpop.permute.xlu2 %739 }
 0x16a   :  { %v549_v47 = vpack.c.bf16 %v2021_v37, %v2023_v41 }
 0x16c   :  { %844 = vmatpush.bf16.msrb.mxu2 %v551_v36 }
 0x16d   :  { %v472_v42 = vpop.f32.mrf.mxu3 }
 0x16e   :  { %v406_v43 = vpop.f32.mrf.mxu0  ;;  %v473_v46 = vadd.f32 %v472_v42, %v310_v8  ;;  %v2025_v55 = vpop.eup %2024 }
 0x16f   :  { %v407_v54 = vadd.f32 %v406_v43, %v275_v25  ;;  %v436_v43 = vadd.f32 %v2716_v57, %v235_v26  ;;  %v1927_v57 = vld [vmem:[%s3359_s5] sm:$0xff] }
 0x170   :  { %2026 = vtanh.f32 %v473_v46  ;;  %845 = vmatpush.bf16.msrb.mxu2 %v549_v47 }
 0x171   :  { %2028 = vtanh.f32 %v468_v45 }
 0x172   :  { %2030 = vtanh.f32 %v466_v48 }
 0x173   :  { %2032 = vtanh.f32 %v461_v50 }
 0x174   :  { %2034 = vtanh.f32 %v463_v53 }
 0x175   :  { %2036 = vtanh.f32 %v407_v54 }
 0x176   :  { %v408_v62 = vpop.f32.mrf.mxu0  ;;  %v2027_v2 = vpop.eup %2026 }
 0x177   :  { %v409_v8 = vadd.f32 %v408_v62, %v280_v34  ;;  %v554_v3 = vpack.c.bf16 %v2027_v2, %v2025_v55  ;;  %v2029_v12 = vpop.eup %2028  ;;  %v443_v34 = vadd.f32 %v2734_v7, %v250_v21  ;;  %v1928_v62 = vld [vmem:[%s3359_s5 + $0x8] sm:$0xff]  ;;  %v1929_v2 = vld [vmem:[%s3359_s5 + $0x10] sm:$0xff] }
 0x178   :  { %v2031_v63 = vpop.eup %2030 }
 0x179   :  { %2038 = vtanh.f32 %v409_v8  ;;  %932 = vmatpush.bf16.msrb.mxu3 %v554_v3  ;;  %v2033_v17 = vpop.eup %2032  ;;  %v552_v19 = vpack.c.bf16 %v2029_v12, %v2031_v63  ;;  %v1930_v8 = vld [vmem:[%s3359_s5 + $0x18] sm:$0xff] }
 0x17a   :  { %2040 = vtanh.f32 %v458_v58  ;;  %v2035_v59 = vpop.eup %2034 }
 0x17b   :  { %2042 = vtanh.f32 %v404_v6  ;;  %v2037_v23 = vpop.eup %2036  ;;  %v550_v28 = vpack.c.bf16 %v2035_v59, %v2033_v17  ;;  %v2767_v6 = vpop.permute.xlu0 %744 }
 0x17c   :  { %2044 = vtanh.f32 %v456_v9  ;;  %v2772_v9 = vpop.permute.xlu2 %734 }
 0x17d   :  { %2046 = vtanh.f32 %v402_v13  ;;  %933 = vmatpush.bf16.msrb.mxu3 %v552_v19  ;;  %v2783_v13 = vpop.permute.xlu1 %729 }
 0x17e   :  { %2048 = vtanh.f32 %v399_v15 }
 0x17f   :  { %v2039_v24 = vpop.eup %2038  ;;  %2050 = vtanh.f32 %v453_v16 }
 0x180   :  { %v2041_v25 = vpop.eup %2040  ;;  %2052 = vtanh.f32 %v397_v18  ;;  %v547_v51 = vpack.c.bf16 %v2039_v24, %v2037_v23  ;;  %v1932_v18 = vld [vmem:[%s3359_s5 + $0x28] sm:$0xff]  ;;  %v1933_v23 = vld [vmem:[%s3359_s5 + $0x30] sm:$0xff] }
 0x181   :  { %v2043_v29 = vpop.eup %2042  ;;  %2054 = vtanh.f32 %v451_v22  ;;  %934 = vmatpush.bf16.msrb.mxu3 %v550_v28  ;;  %v1934_v28 = vld [vmem:[%s3359_s5 + $0x38] sm:$0xff] }
 0x182   :  { %v2045_v32 = vpop.eup %2044  ;;  %2056 = vtanh.f32 %v394_v20  ;;  %846 = vmatpush.bf16.msrb.mxu2 %v547_v51 }
 0x183   :  { %v2047_v33 = vpop.eup %2046  ;;  %2058 = vtanh.f32 %v448_v11  ;;  %v548_v36 = vpack.c.bf16 %v2041_v25, %v2045_v32  ;;  %v2774_v10 = vpop.permute.xlu0 %719  ;;  %v1935_v32 = vld [vmem:[%s3359_s5 + $0x40] sm:$0xff] }
 0x184   :  { %v2049_v0 = vpop.eup %2048  ;;  %2060 = vtanh.f32 %v392_v27  ;;  %v545_v37 = vpack.c.bf16 %v2043_v29, %v2047_v33  ;;  %v2776_v3 = vpop.permute.xlu2 %709 }
 0x185   :  { %v2051_v38 = vpop.eup %2050  ;;  %2062 = vtanh.f32 %v446_v31  ;;  %935 = vmatpush.bf16.msrb.mxu3 %v548_v36  ;;  %v2789_v16 = vpop.permute.xlu1 %724 }
 0x186   :  { %v2053_v39 = vpop.eup %2052  ;;  %2064 = vtanh.f32 %v389_v4  ;;  %847 = vmatpush.bf16.msrb.mxu2 %v545_v37 }
 0x187   :  { %v2055_v60 = vpop.eup %2054  ;;  %2066 = vtanh.f32 %v443_v34  ;;  %v543_v42 = vpack.c.bf16 %v2049_v0, %v2053_v39 }
 0x188   :  { %v2057_v7 = vpop.eup %2056  ;;  %2068 = vtanh.f32 %v387_v35  ;;  %v546_v41 = vpack.c.bf16 %v2051_v38, %v2055_v60  ;;  %v1936_v60 = vld [vmem:[%s3359_s5 + $0x48] sm:$0xff] }
 0x189   :  { %v2059_v56 = vpop.eup %2058  ;;  %2070 = vtanh.f32 %v441_v14 }
 0x18a   :  { %v2061_v44 = vpop.eup %2060  ;;  %936 = vmatpush.bf16.msrb.mxu3 %v546_v41  ;;  %848 = vmatpush.bf16.msrb.mxu2 %v543_v42  ;;  %2072 = vtanh.f32 %v438_v40 }
 0x18b   :  { %v2063_v1 = vpop.eup %2062  ;;  %v541_v47 = vpack.c.bf16 %v2057_v7, %v2061_v44  ;;  %2074 = vtanh.f32 %v436_v43  ;;  %v2778_v12 = vpop.permute.xlu0 %714 }
 0x18c   :  { %v2065_v45 = vpop.eup %2064  ;;  %v544_v46 = vpack.c.bf16 %v2059_v56, %v2063_v1  ;;  %v2785_v15 = vpop.permute.xlu2 %664 }
 0x18d   :  { %v2067_v48 = vpop.eup %2066  ;;  %v2798_v59 = vpop.permute.xlu1 %659 }
 0x18e   :  { %v2069_v61 = vpop.eup %2068  ;;  %937 = vmatpush.bf16.msrb.mxu3 %v544_v46  ;;  %849 = vmatpush.bf16.msrb.mxu2 %v541_v47 }
 0x18f   :  { %v2071_v50 = vpop.eup %2070  ;;  %v539_v53 = vpack.c.bf16 %v2065_v45, %v2069_v61 }
 0x190   :  { %v542_v52 = vpack.c.bf16 %v2067_v48, %v2071_v50  ;;  %v2073_v54 = vpop.eup %2072 }
 0x191   :  { %v2075_v55 = vpop.eup %2074 }
 0x192   :  { %938 = vmatpush.bf16.msrb.mxu3 %v542_v52  ;;  %850 = vmatpush.bf16.msrb.mxu2 %v539_v53  ;;  %v540_v58 = vpack.c.bf16 %v2073_v54, %v2075_v55  ;;  %v1937_v54 = vld [vmem:[%s3359_s5 + $0x50] sm:$0xff] }
 0x193   :  { %v2787_v63 = vpop.permute.xlu0 %699 }
 0x194   :  { %v2791_v17 = vpop.permute.xlu2 %649 }
 0x195   :  { %851 = vmatmul.bf16.vlgmr.msrb.gmra.mxu2 %v1927_v57  ;;  %v2807_v20 = vpop.permute.xlu1 %704 }
 0x196   :  { %939 = vmatpush.bf16.msrb.mxu3 %v540_v58 }
 0x199   :  { %940 = vmatmul.bf16.vlgmr.msrb.gmra.mxu3 %v1927_v57 }
 0x19b   :  { %v2796_v19 = vpop.permute.xlu0 %654 }
 0x19c   :  { %v2800_v21 = vpop.permute.xlu2 %694 }
 0x19d   :  { %v2813_v25 = vpop.permute.xlu1 %689 }
 0x1a3   :  { %v2802_v22 = vpop.permute.xlu0 %639 }
 0x1a4   :  { %v2809_v24 = vpop.permute.xlu2 %679 }
 0x1a5   :  { %856 = vmatmul.bf16.gmra.mxu2 %v1928_v62  ;;  %v2822_v29 = vpop.permute.xlu1 %644 }
 0x1a9   :  { %945 = vmatmul.bf16.gmra.mxu3 %v1928_v62 }
 0x1ab   :  { %v2811_v11 = vpop.permute.xlu0 %684 }
 0x1ac   :  { %v2815_v27 = vpop.permute.xlu2 %634 }
 0x1ad   :  { %v2831_v4 = vpop.permute.xlu1 %629 }
 0x1b3   :  { %v2820_v51 = vpop.permute.xlu0 %669 }
 0x1b4   :  { %v2824_v30 = vpop.permute.xlu2 %619 }
 0x1b5   :  { %861 = vmatmul.bf16.gmra.mxu2 %v1929_v2  ;;  %v2833_v0 = vpop.permute.xlu1 %674 }
 0x1b9   :  { %950 = vmatmul.bf16.gmra.mxu3 %v1929_v2 }
 0x1bb   :  { %v2826_v31 = vpop.permute.xlu0 %624 }
 0x1bc   :  { %v615_v33 = vpop.permute.xlu2 %614 }
 0x1bd   :  { %v610_v42 = vpop.permute.xlu1 %609 }
 0x1c3   :  { %v600_v26 = vpop.permute.xlu0 %599 }
 0x1c4   :  { %v590_v36 = vpop.permute.xlu2 %589 }
 0x1c5   :  { %866 = vmatmul.bf16.gmra.mxu2 %v1930_v8  ;;  %v605_v50 = vpop.permute.xlu1 %604 }
 0x1c9   :  { %955 = vmatmul.bf16.gmra.mxu3 %v1930_v8 }
 0x1cb   :  { %v595_v38 = vpop.permute.xlu0 %594 }
 0x1d5   :  { %871 = vmatmul.bf16.gmra.mxu2 %v1931_v49 }
 0x1d9   :  { %960 = vmatmul.bf16.gmra.mxu3 %v1931_v49 }
 0x1e5   :  { %876 = vmatmul.bf16.gmra.mxu2 %v1932_v18 }
 0x1e9   :  { %965 = vmatmul.bf16.gmra.mxu3 %v1932_v18 }
 0x1f5   :  { %881 = vmatmul.bf16.gmra.mxu2 %v1933_v23 }
 0x1f9   :  { %970 = vmatmul.bf16.gmra.mxu3 %v1933_v23 }
 0x205   :  { %886 = vmatmul.bf16.gmra.mxu2 %v1934_v28 }
 0x209   :  { %975 = vmatmul.bf16.gmra.mxu3 %v1934_v28 }
 0x215   :  { %891 = vmatmul.bf16.gmra.mxu2 %v1935_v32 }
 0x218   :  { %v852_v34 = vpop.f32.mrf.mxu2 }
 0x219   :  { %980 = vmatmul.bf16.gmra.mxu3 %v1935_v32  ;;  %v853_v37 = vadd.f32 %v852_v34, %v590_v36 }
 0x21b   :  { %2076 = vtanh.f32 %v853_v37 }
 0x21c   :  { %v941_v35 = vpop.f32.mrf.mxu3 }
 0x21d   :  { %v942_v40 = vadd.f32 %v941_v35, %v590_v36  ;;  %v1938_v36 = vld [vmem:[%s3359_s5 + $0x58] sm:$0xff] }
 0x220   :  { %v854_v14 = vpop.f32.mrf.mxu2 }
 0x221   :  { %v855_v39 = vadd.f32 %v854_v14, %v595_v38  ;;  %v2077_v56 = vpop.eup %2076 }
 0x223   :  { %2078 = vtanh.f32 %v855_v39 }
 0x224   :  { %v943_v7 = vpop.f32.mrf.mxu3  ;;  %2080 = vtanh.f32 %v942_v40 }
 0x225   :  { %v944_v41 = vadd.f32 %v943_v7, %v595_v38  ;;  %896 = vmatmul.bf16.gmra.mxu2 %v1936_v60 }
 0x227   :  { %2082 = vtanh.f32 %v944_v41 }
 0x228   :  { %v857_v43 = vpop.f32.mrf.mxu2 }
 0x229   :  { %v2079_v44 = vpop.eup %2078  ;;  %985 = vmatmul.bf16.gmra.mxu3 %v1936_v60  ;;  %v858_v48 = vadd.f32 %v857_v43, %v600_v26 }
 0x22a   :  { %v2838_v1 = vpack.c.bf16 %v2079_v44, %v2077_v56  ;;  %v2840_v45 = vpop.eup %2080 }
 0x22b   :  { %2084 = vtanh.f32 %v858_v48  ;;  %v1939_v48 = vld [vmem:[%s3359_s5 + $0x60] sm:$0xff] }
 0x22c   :  { %v946_v46 = vpop.f32.mrf.mxu3 }
 0x22d   :  { %v2842_v47 = vpop.eup %2082  ;;  %v947_v57 = vadd.f32 %v946_v46, %v600_v26 }
 0x230   :  { %v859_v52 = vpop.f32.mrf.mxu2 }
 0x231   :  { %v860_v53 = vadd.f32 %v859_v52, %v605_v50  ;;  %v2085_v62 = vpop.eup %2084 }
 0x233   :  { %2086 = vtanh.f32 %v860_v53 }
 0x234   :  { %v948_v55 = vpop.f32.mrf.mxu3  ;;  %2088 = vtanh.f32 %v947_v57 }
 0x235   :  { %v949_v58 = vadd.f32 %v948_v55, %v605_v50  ;;  %901 = vmatmul.bf16.gmra.mxu2 %v1937_v54 }
 0x237   :  { %2090 = vtanh.f32 %v949_v58 }
 0x238   :  { %v862_v2 = vpop.f32.mrf.mxu2 }
 0x239   :  { %v2087_v8 = vpop.eup %2086  ;;  %990 = vmatmul.bf16.gmra.mxu3 %v1937_v54  ;;  %v863_v32 = vadd.f32 %v862_v2, %v610_v42 }
 0x23a   :  { %v2849_v49 = vpack.c.bf16 %v2087_v8, %v2085_v62  ;;  %v2851_v18 = vpop.eup %2088 }
 0x23b   :  { %2092 = vtanh.f32 %v863_v32 }
 0x23c   :  { %v951_v23 = vpop.f32.mrf.mxu3 }
 0x23d   :  { %v2853_v28 = vpop.eup %2090  ;;  %v952_v37 = vadd.f32 %v951_v23, %v610_v42 }
 0x240   :  { %v864_v34 = vpop.f32.mrf.mxu2 }
 0x241   :  { %v865_v35 = vadd.f32 %v864_v34, %v615_v33  ;;  %v2093_v39 = vpop.eup %2092 }
 0x243   :  { %2094 = vtanh.f32 %v865_v35 }
 0x244   :  { %v953_v38 = vpop.f32.mrf.mxu3  ;;  %2096 = vtanh.f32 %v952_v37  ;;  %v1941_v37 = vld [vmem:[%s3359_s5 + $0x70] sm:$0xff] }
 0x245   :  { %v954_v14 = vadd.f32 %v953_v38, %v615_v33  ;;  %906 = vmatmul.bf16.gmra.mxu2 %v1938_v36 }
 0x247   :  { %2098 = vtanh.f32 %v954_v14 }
 0x248   :  { %v867_v60 = vpop.f32.mrf.mxu2 }
 0x249   :  { %v2095_v40 = vpop.eup %2094  ;;  %995 = vmatmul.bf16.gmra.mxu3 %v1938_v36  ;;  %v868_v44 = vadd.f32 %v867_v60, %v2824_v30 }
 0x24a   :  { %v2860_v7 = vpack.c.bf16 %v2095_v40, %v2093_v39  ;;  %v2862_v41 = vpop.eup %2096  ;;  %v1942_v40 = vld [vmem:[%s3359_s5 + $0x78] sm:$0xff] }
 0x24b   :  { %2100 = vtanh.f32 %v868_v44 }
 0x24c   :  { %v956_v56 = vpop.f32.mrf.mxu3 }
 0x24d   :  { %v2864_v43 = vpop.eup %2098  ;;  %v957_v50 = vadd.f32 %v956_v56, %v2824_v30 }
 0x24e   :  { %v1106_v42 = vpack.c.bf16 %v2864_v43, %v2862_v41  ;;  %v1873_v41 = vld [vmem:[%s3361_s7 + $0x20] sm:$0xf]  ;;  %v1948_v43 = vld [vmem:[%s3361_s7 + $0x24] sm:$0xf0] }
 0x250   :  { %v869_v33 = vpop.f32.mrf.mxu2 }
 0x251   :  { %v870_v46 = vadd.f32 %v869_v33, %v2826_v31  ;;  %v2101_v54 = vpop.eup %2100 }
 0x253   :  { %2102 = vtanh.f32 %v870_v46 }
 0x254   :  { %v958_v52 = vpop.f32.mrf.mxu3  ;;  %2104 = vtanh.f32 %v957_v50 }
 0x255   :  { %v959_v53 = vadd.f32 %v958_v52, %v2826_v31  ;;  %911 = vmatmul.bf16.gmra.mxu2 %v1939_v48  ;;  %v1940_v31 = vld [vmem:[%s3359_s5 + $0x68] sm:$0xff] }
 0x257   :  { %2106 = vtanh.f32 %v959_v53 }
 0x258   :  { %v872_v57 = vpop.f32.mrf.mxu2 }
 0x259   :  { %v2103_v55 = vpop.eup %2102  ;;  %1000 = vmatmul.bf16.gmra.mxu3 %v1939_v48 }
 0x25a   :  { %v2875_v58 = vpack.c.bf16 %v2103_v55, %v2101_v54  ;;  %v2877_v62 = vpop.eup %2104 }
 0x25c   :  { %v2879_v2 = vpop.f32.mrf.mxu3 }
 0x25d   :  { %v2881_v8 = vpop.eup %2106 }
 0x25e   :  { %v1108_v30 = vpack.c.bf16 %v2881_v8, %v2877_v62 }
 0x260   :  { %v874_v23 = vpop.f32.mrf.mxu2 }
 0x264   :  { %v2888_v32 = vpop.f32.mrf.mxu3 }
 0x265   :  { %916 = vmatmul.bf16.gmra.mxu2 %v1940_v31 }
 0x268   :  { %v877_v34 = vpop.f32.mrf.mxu2 }
 0x269   :  { %1005 = vmatmul.bf16.gmra.mxu3 %v1940_v31  ;;  %v878_v31 = vadd.f32 %v877_v34, %v2802_v22 }
 0x26c   :  { %v2890_v35 = vpop.f32.mrf.mxu3 }
 0x270   :  { %v879_v36 = vpop.f32.mrf.mxu2 }
 0x271   :  { %v880_v55 = vadd.f32 %v879_v36, %v2822_v29 }
 0x274   :  { %v2895_v38 = vpop.f32.mrf.mxu3 }
 0x275   :  { %921 = vmatmul.bf16.gmra.mxu2 %v1941_v37 }
 0x278   :  { %v882_v14 = vpop.f32.mrf.mxu2 }
 0x279   :  { %1010 = vmatmul.bf16.gmra.mxu3 %v1941_v37  ;;  %v883_v53 = vadd.f32 %v882_v14, %v2791_v17 }
 0x27c   :  { %v2897_v39 = vpop.f32.mrf.mxu3 }
 0x280   :  { %v884_v60 = vpop.f32.mrf.mxu2 }
 0x281   :  { %v885_v50 = vadd.f32 %v884_v60, %v2796_v19 }
 0x284   :  { %v2902_v56 = vpop.f32.mrf.mxu3 }
 0x285   :  { %926 = vmatmul.bf16.gmra.mxu2 %v1942_v40 }
 0x288   :  { %v887_v44 = vpop.f32.mrf.mxu2 }
 0x289   :  { %1015 = vmatmul.bf16.gmra.mxu3 %v1942_v40  ;;  %v888_v46 = vadd.f32 %v887_v44, %v2798_v59  ;;  %v875_v44 = vadd.f32 %v874_v23, %v2815_v27 }
 0x28b   :  { %2108 = vtanh.f32 %v888_v46  ;;  %v873_v46 = vadd.f32 %v872_v57, %v2831_v4 }
 0x28c   :  { %v976_v33 = vpop.f32.mrf.mxu3 }
 0x290   :  { %v889_v48 = vpop.f32.mrf.mxu2 }
 0x291   :  { %v890_v52 = vadd.f32 %v889_v48, %v2785_v15  ;;  %v2109_v37 = vpop.eup %2108 }
 0x293   :  { %2110 = vtanh.f32 %v890_v52 }
 0x294   :  { %v978_v54 = vpop.f32.mrf.mxu3  ;;  %2112 = vtanh.f32 %v885_v50 }
 0x295   :  { %2114 = vtanh.f32 %v883_v53 }
 0x296   :  { %2116 = vtanh.f32 %v880_v55 }
 0x297   :  { %2118 = vtanh.f32 %v878_v31 }
 0x298   :  { %v892_v40 = vpop.f32.mrf.mxu2  ;;  %2120 = vtanh.f32 %v875_v44 }
 0x299   :  { %v2111_v61 = vpop.eup %2110  ;;  %v893_v36 = vadd.f32 %v892_v40, %v2820_v51  ;;  %2122 = vtanh.f32 %v873_v46 }
 0x29a   :  { %v1115_v60 = vpack.c.bf16 %v2111_v61, %v2109_v37  ;;  %v2113_v26 = vpop.eup %2112 }
 0x29b   :  { %v2115_v48 = vpop.eup %2114  ;;  %2124 = vtanh.f32 %v893_v36  ;;  %v977_v36 = vadd.f32 %v976_v33, %v2798_v59  ;;  %v967_v33 = vadd.f32 %v2890_v35, %v2802_v22 }
 0x29c   :  { %v981_v14 = vpop.f32.mrf.mxu3  ;;  %1309 = vmatpush.bf16.msrb.mxu0 %v1115_v60  ;;  %1967 = vmatpush.bf16.msra.mxu2 %v1115_v60  ;;  %v1113_v34 = vpack.c.bf16 %v2113_v26, %v2115_v48  ;;  %v2117_v50 = vpop.eup %2116 }
 0x29d   :  { %v2119_v23 = vpop.eup %2118  ;;  %v982_v57 = vadd.f32 %v981_v14, %v2820_v51  ;;  %v979_v51 = vadd.f32 %v978_v54, %v2785_v15 }
 0x29e   :  { %v1111_v53 = vpack.c.bf16 %v2117_v50, %v2119_v23  ;;  %v2121_v55 = vpop.eup %2120  ;;  %v974_v50 = vadd.f32 %v2902_v56, %v2796_v19  ;;  %v964_v23 = vadd.f32 %v2888_v32, %v2815_v27 }
 0x29f   :  { %v2123_v37 = vpop.eup %2122 }
 0x2a0   :  { %v894_v52 = vpop.f32.mrf.mxu2  ;;  %1310 = vmatpush.bf16.msrb.mxu0 %v1113_v34  ;;  %1968 = vmatpush.bf16.msra.mxu2 %v1113_v34  ;;  %v1109_v40 = vpack.c.bf16 %v2121_v55, %v2123_v37 }
 0x2a1   :  { %v895_v61 = vadd.f32 %v894_v52, %v2833_v0  ;;  %v2916_v44 = vpop.eup %2124  ;;  %v972_v52 = vadd.f32 %v2897_v39, %v2791_v17  ;;  %v1857_v17 = vld [vmem:[%s3361_s7] sm:$0xf] }
 0x2a3   :  { %2126 = vtanh.f32 %v895_v61 }
 0x2a4   :  { %v983_v31 = vpop.f32.mrf.mxu3  ;;  %1311 = vmatpush.bf16.msrb.mxu0 %v1111_v53  ;;  %1969 = vmatpush.bf16.msra.mxu2 %v1111_v53  ;;  %2128 = vtanh.f32 %v982_v57 }
 0x2a5   :  { %v984_v26 = vadd.f32 %v983_v31, %v2833_v0  ;;  %v962_v31 = vadd.f32 %v2879_v2, %v2831_v4 }
 0x2a7   :  { %2130 = vtanh.f32 %v984_v26 }
 0x2a8   :  { %v897_v60 = vpop.f32.mrf.mxu2  ;;  %1312 = vmatpush.bf16.msrb.mxu0 %v1109_v40  ;;  %1970 = vmatpush.bf16.msra.mxu2 %v1109_v40  ;;  %2132 = vtanh.f32 %v979_v51 }
 0x2a9   :  { %v2918_v46 = vpop.eup %2126  ;;  %v898_v15 = vadd.f32 %v897_v60, %v2809_v24  ;;  %2134 = vtanh.f32 %v977_v36 }
 0x2aa   :  { %v1117_v14 = vpack.c.bf16 %v2918_v46, %v2916_v44  ;;  %v2923_v48 = vpop.eup %2128  ;;  %2136 = vtanh.f32 %v974_v50  ;;  %v1945_v44 = vld [vmem:[%s3361_s7 + $0x14] sm:$0xf]  ;;  %v1867_v46 = vld [vmem:[%s3361_s7 + $0x18] sm:$0xf0] }
 0x2ab   :  { %2138 = vtanh.f32 %v898_v15 }
 0x2ac   :  { %v986_v0 = vpop.f32.mrf.mxu3  ;;  %1313 = vmatpush.bf16.msrb.mxu0 %v2875_v58  ;;  %1971 = vmatpush.bf16.msra.mxu2 %v2875_v58  ;;  %v969_v58 = vadd.f32 %v2895_v38, %v2822_v29  ;;  %v1944_v29 = vld [vmem:[%s3361_s7 + $0x4] sm:$0xf0]  ;;  %v1958_v38 = vld [vmem:[%s3361_s7 + $0x74] sm:$0xf0] }
 0x2ad   :  { %v2928_v34 = vpop.eup %2130  ;;  %v987_v56 = vadd.f32 %v986_v0, %v2809_v24  ;;  %v1913_v24 = vld [vmem:[%s3361_s7 + $0x70] sm:$0xf]  ;;  %v2962_v57 = vor.u32 %v1944_v29, %v1857_v17 }
 0x2ae   :  { %v1118_v54 = vpack.c.bf16 %v2928_v34, %v2923_v48  ;;  %v2133_v39 = vpop.eup %2132  ;;  %v2964_v53 = vor.u32 %v1958_v38, %v1913_v24  ;;  %v1865_v17 = vld [vmem:[%s3361_s7 + $0x10] sm:$0xf]  ;;  %v1951_v34 = vld [vmem:[%s3361_s7 + $0x44] sm:$0xf] }
 0x2af   :  { %v2135_v35 = vpop.eup %2134 }
 0x2b0   :  { %v899_v59 = vpop.f32.mrf.mxu2  ;;  %1314 = vmatpush.bf16.msrb.mxu0 %v2860_v7  ;;  %1972 = vmatpush.bf16.msra.mxu2 %v2860_v7  ;;  %v1116_v61 = vpack.c.bf16 %v2133_v39, %v2135_v35  ;;  %v1946_v39 = vld [vmem:[%s3361_s7 + $0x14] sm:$0xf0] }
 0x2b1   :  { %v900_v19 = vadd.f32 %v899_v59, %v2811_v11 }
 0x2b3   :  { %2140 = vtanh.f32 %v900_v19 }
 0x2b4   :  { %2142 = vtanh.f32 %v972_v52  ;;  %v988_v7 = vpop.f32.mrf.mxu3  ;;  %1315 = vmatpush.bf16.msrb.mxu0 %v2849_v49  ;;  %1973 = vmatpush.bf16.msra.mxu2 %v2849_v49  ;;  %v2137_v49 = vpop.eup %2136 }
 0x2b5   :  { %2144 = vtanh.f32 %v969_v58  ;;  %v989_v22 = vadd.f32 %v988_v7, %v2811_v11  ;;  %v2966_v55 = vpop.eup %2138  ;;  %v2994_v7 = vor.u32 %v1946_v39, %v1865_v17 }
 0x2b6   :  { %2146 = vtanh.f32 %v987_v56 }
 0x2b7   :  { %2148 = vtanh.f32 %v989_v22 }
 0x2b8   :  { %2150 = vtanh.f32 %v967_v33  ;;  %v902_v37 = vpop.f32.mrf.mxu2  ;;  %1316 = vmatpush.bf16.msrb.mxu0 %v2838_v1  ;;  %1974 = vmatpush.bf16.msra.mxu2 %v2838_v1 }
 0x2b9   :  { %v2972_v11 = vpop.eup %2140  ;;  %2152 = vtanh.f32 %v964_v23  ;;  %v903_v51 = vadd.f32 %v902_v37, %v2813_v25  ;;  %v3367_v37 = vpack.c.bf16 %v2842_v47, %v2840_v45 }
 0x2ba   :  { %v2143_v27 = vpop.eup %2142  ;;  %v1119_v32 = vpack.c.bf16 %v2972_v11, %v2966_v55  ;;  %2154 = vtanh.f32 %v962_v31 }
 0x2bb   :  { %v2145_v26 = vpop.eup %2144  ;;  %1317 = vmatmul.bf16.vlgmr.msrb.gmra.mxu0 %v2962_v57  ;;  %1352 = vmatmul.bf16.vlgmr.msra.gmra.mxu2 %v2964_v53  ;;  %v1114_v4 = vpack.c.bf16 %v2137_v49, %v2143_v27  ;;  %2156 = vtanh.f32 %v903_v51  ;;  %v3366_v49 = vpack.c.bf16 %v2853_v28, %v2851_v18  ;;  %v3031_v18 = vor.u32 %v1948_v43, %v1873_v41  ;;  %v1950_v51 = vld [vmem:[%s3361_s7 + $0x34] sm:$0xf0] }
 0x2bc   :  { %1407 = vmatpush.bf16.msra.mxu0 %v1116_v61  ;;  %v2978_v2 = vpop.eup %2146  ;;  %v991_v40 = vpop.f32.mrf.mxu3 }
 0x2bd   :  { %v2980_v60 = vpop.eup %2148  ;;  %v992_v58 = vadd.f32 %v991_v40, %v2813_v25 }
 0x2be   :  { %v2151_v1 = vpop.eup %2150  ;;  %v1120_v36 = vpack.c.bf16 %v2980_v60, %v2978_v2  ;;  %v1949_v2 = vld [vmem:[%s3361_s7 + $0x34] sm:$0xf]  ;;  %v1883_v60 = vld [vmem:[%s3361_s7 + $0x38] sm:$0xf0] }
 0x2bf   :  { %v1112_v0 = vpack.c.bf16 %v2145_v26, %v2151_v1  ;;  %v2153_v50 = vpop.eup %2152  ;;  %v1881_v1 = vld [vmem:[%s3361_s7 + $0x30] sm:$0xf] }
 0x2c0   :  { %1408 = vmatpush.bf16.msra.mxu0 %v1114_v4  ;;  %v904_v15 = vpop.f32.mrf.mxu2  ;;  %v2155_v59 = vpop.eup %2154 }
 0x2c1   :  { %v905_v52 = vadd.f32 %v904_v15, %v2800_v21  ;;  %v1110_v19 = vpack.c.bf16 %v2153_v50, %v2155_v59  ;;  %v2996_v29 = vpop.eup %2156  ;;  %v1889_v59 = vld [vmem:[%s3361_s7 + $0x40] sm:$0xf] }
 0x2c3   :  { %2158 = vtanh.f32 %v905_v52 }
 0x2c4   :  { %1409 = vmatpush.bf16.msra.mxu0 %v1112_v0  ;;  %v993_v56 = vpop.f32.mrf.mxu3  ;;  %2160 = vtanh.f32 %v992_v58  ;;  %v3054_v0 = vor.u32 %v1950_v51, %v1881_v1  ;;  %v1952_v58 = vld [vmem:[%s3361_s7 + $0x44] sm:$0xf0] }
 0x2c5   :  { %v994_v33 = vadd.f32 %v993_v56, %v2800_v21  ;;  %v3067_v56 = vor.u32 %v1952_v58, %v1889_v59  ;;  %v1956_v1 = vld [vmem:[%s3361_s7 + $0x64] sm:$0xf0] }
 0x2c7   :  { %2162 = vtanh.f32 %v994_v33 }
 0x2c8   :  { %1410 = vmatpush.bf16.msra.mxu0 %v1110_v19  ;;  %v907_v25 = vpop.f32.mrf.mxu2 }
 0x2c9   :  { %v2998_v24 = vpop.eup %2158  ;;  %v908_v23 = vadd.f32 %v907_v25, %v2787_v63  ;;  %v1897_v25 = vld [vmem:[%s3361_s7 + $0x50] sm:$0xf] }
 0x2ca   :  { %v1121_v38 = vpack.c.bf16 %v2998_v24, %v2996_v29  ;;  %v3006_v21 = vpop.eup %2160 }
 0x2cb   :  { %1322 = vmatmul.bf16.gmra.mxu0 %v2994_v7  ;;  %2164 = vtanh.f32 %v908_v23 }
 0x2cc   :  { %1411 = vmatpush.bf16.msra.mxu0 %v1108_v30  ;;  %v996_v22 = vpop.f32.mrf.mxu3 }
 0x2cd   :  { %v3008_v35 = vpop.eup %2162  ;;  %v997_v61 = vadd.f32 %v996_v22, %v2787_v63  ;;  %v1954_v22 = vld [vmem:[%s3361_s7 + $0x54] sm:$0xf0] }
 0x2ce   :  { %v1122_v62 = vpack.c.bf16 %v3008_v35, %v3006_v21  ;;  %v3076_v23 = vor.u32 %v1954_v22, %v1897_v25 }
 0x2d0   :  { %1412 = vmatpush.bf16.msra.mxu0 %v1106_v42  ;;  %v909_v8 = vpop.f32.mrf.mxu2 }
 0x2d1   :  { %v910_v30 = vadd.f32 %v909_v8, %v2807_v20  ;;  %v3033_v63 = vpop.eup %2164 }
 0x2d3   :  { %2166 = vtanh.f32 %v910_v30 }
 0x2d4   :  { %1413 = vmatpush.bf16.msra.mxu0 %v3366_v49  ;;  %v998_v31 = vpop.f32.mrf.mxu3  ;;  %2168 = vtanh.f32 %v997_v61 }
 0x2d5   :  { %v999_v42 = vadd.f32 %v998_v31, %v2807_v20 }
 0x2d7   :  { %2170 = vtanh.f32 %v999_v42 }
 0x2d8   :  { %1414 = vmatpush.bf16.msra.mxu0 %v3367_v37  ;;  %v912_v28 = vpop.f32.mrf.mxu2  ;;  %v1905_v37 = vld [vmem:[%s3361_s7 + $0x60] sm:$0xf] }
 0x2d9   :  { %v3035_v27 = vpop.eup %2166  ;;  %v3091_v58 = vor.u32 %v1956_v1, %v1905_v37 }
 0x2da   :  { %v1123_v26 = vpack.c.bf16 %v3035_v27, %v3033_v63  ;;  %v3040_v4 = vpop.eup %2168 }
 0x2db   :  { %1327 = vmatmul.bf16.gmra.mxu0 %v3031_v18 }
 0x2dc   :  { %v3046_v40 = vpop.f32.mrf.mxu3 }
 0x2dd   :  { %v3042_v20 = vpop.eup %2170  ;;  %v1002_v55 = vadd.f32 %v3046_v40, %v2776_v3 }
 0x2de   :  { %v1124_v45 = vpack.c.bf16 %v3042_v20, %v3040_v4  ;;  %v1875_v4 = vld [vmem:[%s3361_s7 + $0x28] sm:$0xf0]  ;;  %v1953_v20 = vld [vmem:[%s3361_s7 + $0x54] sm:$0xf] }
 0x2e0   :  { %v914_v47 = vpop.f32.mrf.mxu2 }
 0x2e1   :  { %v915_v25 = vadd.f32 %v914_v47, %v2778_v12 }
 0x2e4   :  { %v3056_v15 = vpop.f32.mrf.mxu3 }
 0x2e8   :  { %v917_v50 = vpop.f32.mrf.mxu2 }
 0x2e9   :  { %v918_v59 = vadd.f32 %v917_v50, %v2774_v10 }
 0x2eb   :  { %1332 = vmatmul.bf16.gmra.mxu0 %v3054_v0 }
 0x2ec   :  { %v3065_v19 = vpop.f32.mrf.mxu3 }
 0x2f0   :  { %v919_v52 = vpop.f32.mrf.mxu2 }
 0x2f1   :  { %v920_v51 = vadd.f32 %v919_v52, %v2789_v16 }
 0x2f4   :  { %v1008_v39 = vpop.f32.mrf.mxu3 }
 0x2f8   :  { %v922_v17 = vpop.f32.mrf.mxu2 }
 0x2f9   :  { %v923_v43 = vadd.f32 %v922_v17, %v2783_v13 }
 0x2fb   :  { %1337 = vmatmul.bf16.gmra.mxu0 %v3067_v56 }
 0x2fc   :  { %v1011_v30 = vpop.f32.mrf.mxu3 }
 0x300   :  { %v924_v33 = vpop.f32.mrf.mxu2 }
 0x301   :  { %v925_v31 = vadd.f32 %v924_v33, %v2772_v9 }
 0x304   :  { %v1013_v42 = vpop.f32.mrf.mxu3 }
 0x308   :  { %v927_v8 = vpop.f32.mrf.mxu2 }
 0x309   :  { %v928_v49 = vadd.f32 %v927_v8, %v2765_v5 }
 0x30b   :  { %1342 = vmatmul.bf16.gmra.mxu0 %v3076_v23  ;;  %2172 = vtanh.f32 %v928_v49  ;;  %v913_v49 = vadd.f32 %v912_v28, %v2776_v3 }
 0x310   :  { %v929_v61 = vpop.f32.mrf.mxu2 }
 0x311   :  { %v930_v41 = vadd.f32 %v929_v61, %v2767_v6  ;;  %v2173_v33 = vpop.eup %2172  ;;  %v1016_v61 = vpop.f32.mrf.mxu3 }
 0x313   :  { %2174 = vtanh.f32 %v930_v41 }
 0x314   :  { %2176 = vtanh.f32 %v925_v31 }
 0x315   :  { %2178 = vtanh.f32 %v923_v43 }
 0x316   :  { %2180 = vtanh.f32 %v920_v51 }
 0x317   :  { %2182 = vtanh.f32 %v918_v59  ;;  %v1017_v59 = vadd.f32 %v1016_v61, %v2765_v5  ;;  %v1007_v5 = vadd.f32 %v3065_v19, %v2774_v10  ;;  %v1915_v61 = vld [vmem:[%s3361_s7 + $0x78] sm:$0xf0] }
 0x318   :  { %2184 = vtanh.f32 %v915_v25 }
 0x319   :  { %v2175_v17 = vpop.eup %2174  ;;  %2186 = vtanh.f32 %v913_v49  ;;  %v1018_v51 = vpop.f32.mrf.mxu3 }
 0x31a   :  { %v1131_v22 = vpack.c.bf16 %v2175_v17, %v2173_v33  ;;  %v2177_v8 = vpop.eup %2176  ;;  %v1019_v28 = vadd.f32 %v1018_v51, %v2767_v6  ;;  %v1014_v33 = vadd.f32 %v1013_v42, %v2772_v9  ;;  %v1012_v17 = vadd.f32 %v1011_v30, %v2783_v13  ;;  %v1943_v9 = vld [vmem:[%s3361_s7 + $0x4] sm:$0xf]  ;;  %v1859_v13 = vld [vmem:[%s3361_s7 + $0x8] sm:$0xf0]  ;;  %v3200_v30 = vpop.permute.xlu2 %1156 }
 0x31b   :  { %1347 = vmatmul.bf16.gmra.mxu0 %v3091_v58  ;;  %v2179_v52 = vpop.eup %2178  ;;  %v1009_v6 = vadd.f32 %v1008_v39, %v2789_v16  ;;  %v1004_v16 = vadd.f32 %v3056_v15, %v2778_v12  ;;  %v3121_v10 = vor.u32 %v1943_v9, %v1859_v13  ;;  %v1907_v39 = vld [vmem:[%s3361_s7 + $0x68] sm:$0xf0]  ;;  %v3202_v42 = vpop.permute.xlu0 %1161 }
 0x31c   :  { %1358 = vmatpush.bf16.msrb.mxu1 %v1131_v22  ;;  %v1129_v50 = vpack.c.bf16 %v2177_v8, %v2179_v52  ;;  %v2181_v31 = vpop.eup %2180  ;;  %2188 = vtanh.f32 %v1019_v28  ;;  %v1957_v52 = vld [vmem:[%s3361_s7 + $0x74] sm:$0xf] }
 0x31d   :  { %v2183_v41 = vpop.eup %2182  ;;  %2190 = vtanh.f32 %v1017_v59 }
 0x31e   :  { %v1127_v43 = vpack.c.bf16 %v2181_v31, %v2183_v41  ;;  %v2185_v37 = vpop.eup %2184  ;;  %2192 = vtanh.f32 %v1014_v33 }
 0x31f   :  { %v2187_v47 = vpop.eup %2186  ;;  %2194 = vtanh.f32 %v1012_v17 }
 0x320   :  { %1359 = vmatpush.bf16.msrb.mxu1 %v1129_v50  ;;  %v1125_v1 = vpack.c.bf16 %v2185_v37, %v2187_v47  ;;  %2196 = vtanh.f32 %v1009_v6  ;;  %v3220_v50 = vor.u32 %v1957_v52, %v1915_v61 }
 0x321   :  { %2198 = vtanh.f32 %v1007_v5 }
 0x322   :  { %2200 = vtanh.f32 %v1004_v16  ;;  %v3210_v8 = vpop.permute.xlu2 %1171 }
 0x323   :  { %2202 = vtanh.f32 %v1002_v55  ;;  %v3212_v49 = vpop.permute.xlu0 %1176 }
 0x324   :  { %1360 = vmatpush.bf16.msrb.mxu1 %v1127_v43 }
 0x328   :  { %1361 = vmatpush.bf16.msrb.mxu1 %v1125_v1 }
 0x32a   :  { %v3224_v41 = vpop.permute.xlu2 %1186 }
 0x32b   :  { %1415 = vmatmul.bf16.vlgmr.msra.gmra.mxu0 %v2962_v57  ;;  %v2189_v57 = vpop.eup %2188 }
 0x32c   :  { %1362 = vmatpush.bf16.msrb.mxu1 %v1123_v26  ;;  %v2191_v29 = vpop.eup %2190 }
 0x32d   :  { %v1132_v24 = vpack.c.bf16 %v2189_v57, %v2191_v29 }
 0x330   :  { %1363 = vmatpush.bf16.msrb.mxu1 %v1121_v38  ;;  %v2193_v38 = vpop.eup %2192 }
 0x331   :  { %v2195_v11 = vpop.eup %2194 }
 0x332   :  { %v1130_v12 = vpack.c.bf16 %v2193_v38, %v2195_v11  ;;  %v3231_v37 = vpop.permute.xlu2 %1201 }
 0x334   :  { %1364 = vmatpush.bf16.msrb.mxu1 %v1119_v32  ;;  %v2197_v32 = vpop.eup %2196 }
 0x335   :  { %v2199_v63 = vpop.eup %2198 }
 0x336   :  { %v1128_v27 = vpack.c.bf16 %v2197_v32, %v2199_v63  ;;  %v2201_v26 = vpop.eup %2200 }
 0x337   :  { %v2203_v3 = vpop.eup %2202 }
 0x338   :  { %1365 = vmatpush.bf16.msrb.mxu1 %v1117_v14  ;;  %v1126_v40 = vpack.c.bf16 %v2201_v26, %v2203_v3  ;;  %v3136_v14 = vor.u32 %v1945_v44, %v1867_v46  ;;  %v1318_v21 = vpop.f32.mrf.mxu0 }
 0x33a   :  { %v3239_v33 = vpop.permute.xlu2 %1216 }
 0x33b   :  { %1366 = vmatmul.bf16.vlgmr.msrb.gmra.mxu1 %v3121_v10  ;;  %1420 = vmatmul.bf16.gmra.mxu0 %v2994_v7  ;;  %v1947_v7 = vld [vmem:[%s3361_s7 + $0x24] sm:$0xf] }
 0x33c   :  { %1456 = vmatpush.bf16.msra.mxu1 %v1132_v24 }
 0x340   :  { %1457 = vmatpush.bf16.msra.mxu1 %v1130_v12  ;;  %v1320_v48 = vpop.f32.mrf.mxu0 }
 0x341   :  { %v1321_v6 = vadd.f32 %v1320_v48, %v3200_v30 }
 0x342   :  { %v3247_v38 = vpop.permute.xlu2 %1555 }
 0x344   :  { %1458 = vmatpush.bf16.msra.mxu1 %v1128_v27 }
 0x348   :  { %1459 = vmatpush.bf16.msra.mxu1 %v1126_v40 }
 0x34a   :  { %v3259_v48 = vpop.permute.xlu2 %1570 }
 0x34b   :  { %1371 = vmatmul.bf16.gmra.mxu1 %v3136_v14  ;;  %1425 = vmatmul.bf16.gmra.mxu0 %v3031_v18  ;;  %v3158_v18 = vor.u32 %v1947_v7, %v1875_v4 }
 0x34c   :  { %1460 = vmatpush.bf16.msra.mxu1 %v1124_v45  ;;  %v1899_v45 = vld [vmem:[%s3361_s7 + $0x58] sm:$0xf0] }
 0x34d   :  { %v3188_v15 = vor.u32 %v1953_v20, %v1899_v45 }
 0x350   :  { %1461 = vmatpush.bf16.msra.mxu1 %v1122_v62  ;;  %v1323_v62 = vpop.f32.mrf.mxu0 }
 0x351   :  { %v1324_v16 = vadd.f32 %v1323_v62, %v3202_v42 }
 0x354   :  { %1462 = vmatpush.bf16.msra.mxu1 %v1120_v36  ;;  %v3168_v36 = vor.u32 %v1949_v2, %v1883_v60 }
 0x358   :  { %1463 = vmatpush.bf16.msra.mxu1 %v1118_v54  ;;  %v1891_v54 = vld [vmem:[%s3361_s7 + $0x48] sm:$0xf0] }
 0x359   :  { %v3178_v35 = vor.u32 %v1951_v34, %v1891_v54 }
 0x35b   :  { %1376 = vmatmul.bf16.gmra.mxu1 %v3158_v18  ;;  %1430 = vmatmul.bf16.gmra.mxu0 %v3054_v0  ;;  %v1325_v0 = vpop.f32.mrf.mxu0 }
 0x363   :  { %v1328_v19 = vpop.f32.mrf.mxu0 }
 0x364   :  { %v1329_v2 = vadd.f32 %v1328_v19, %v3210_v8 }
 0x36b   :  { %1381 = vmatmul.bf16.gmra.mxu1 %v3168_v36  ;;  %1435 = vmatmul.bf16.gmra.mxu0 %v3067_v56  ;;  %v1955_v56 = vld [vmem:[%s3361_s7 + $0x64] sm:$0xf]  ;;  %v1330_v22 = vpop.f32.mrf.mxu0  ;;  %s2295_s7 = smov [#allocation3]  }
 0x36c   :  { %v3204_v25 = vor.u32 %v1955_v56, %v1907_v39  ;;  %v1331_v20 = vadd.f32 %v1330_v22, %v3212_v49  ;;  %s1732_s23 = sshll.u32 %s2295_s7, 4  ;;  %s1733_s23 = int_to_ptr.vmem [resolvable:$true] %s1732_s23 }
 0x373   :  { %v1333_v9 = vpop.f32.mrf.mxu0 }
 0x37b   :  { %1386 = vmatmul.bf16.gmra.mxu1 %v3178_v35  ;;  %1440 = vmatmul.bf16.gmra.mxu0 %v3076_v23  ;;  %v3198_v23 = vpop.permute.xlu1 %1151  ;;  %v1335_v26 = vpop.f32.mrf.mxu0 }
 0x37c   :  { %v1319_v1 = vadd.f32 %v1318_v21, %v3198_v23 }
 0x383   :  { %v1338_v34 = vpop.f32.mrf.mxu0 }
 0x38b   :  { %1391 = vmatmul.bf16.gmra.mxu1 %v3188_v15  ;;  %1445 = vmatmul.bf16.gmra.mxu0 %v3091_v58  ;;  %v3208_v58 = vpop.permute.xlu1 %1166  ;;  %v1340_v52 = vpop.f32.mrf.mxu0 }
 0x38c   :  { %v1326_v27 = vadd.f32 %v1325_v0, %v3208_v58 }
 0x393   :  { %v3222_v31 = vpop.permute.xlu1 %1181 }
 0x39b   :  { %1396 = vmatmul.bf16.gmra.mxu1 %v3204_v25  ;;  %1450 = vmatmul.bf16.gmra.mxu0 %v2964_v53  ;;  %v3226_v53 = vpop.permute.xlu0 %1191  ;;  %v3229_v43 = vpop.permute.xlu1 %1196 }
 0x3a3   :  { %v3233_v47 = vpop.permute.xlu0 %1206  ;;  %v3237_v59 = vpop.permute.xlu1 %1211 }
 0x3ab   :  { %1401 = vmatmul.bf16.gmra.mxu1 %v3220_v50  ;;  %v3241_v17 = vpop.permute.xlu0 %1221  ;;  %v3244_v29 = vpop.permute.xlu1 %1226 }
 0x3b3   :  { %v3249_v55 = vpop.permute.xlu0 %1560  ;;  %v3255_v44 = vpop.permute.xlu1 %1565 }
 0x3b8   :  { %v1367_v51 = vpop.f32.mrf.mxu1 }
 0x3b9   :  { %v1368_v28 = vadd.f32 %v1367_v51, %v1319_v1  ;;  %v1334_v1 = vadd.f32 %v1333_v9, %v3222_v31 }
 0x3bb   :  { %1464 = vmatmul.bf16.vlgmr.msra.gmra.mxu1 %v3121_v10  ;;  %2204 = vtanh.f32 %v1368_v28  ;;  %v3264_v56 = vpop.permute.xlu0 %1575 }
 0x3c0   :  { %v1369_v57 = vpop.f32.mrf.mxu1 }
 0x3c1   :  { %v1370_v5 = vadd.f32 %v1369_v57, %v1321_v6  ;;  %v2205_v13 = vpop.eup %2204  ;;  %v3268_v6 = vpop.permute.xlu1 %1580 }
 0x3c2   :  { %v1633_v12 = vmul.f32 %v2205_v13, %v3247_v38  ;;  %v1336_v13 = vadd.f32 %v1335_v26, %v3224_v41 }
 0x3c3   :  { %2206 = vtanh.f32 %v1370_v5  ;;  %v1343_v5 = vpop.f32.mrf.mxu0 }
 0x3c8   :  { %v1372_v24 = vpop.f32.mrf.mxu1 }
 0x3c9   :  { %v2207_v10 = vpop.eup %2206  ;;  %v1373_v11 = vadd.f32 %v1372_v24, %v1324_v16 }
 0x3ca   :  { %v1635_v32 = vmul.f32 %v2207_v10, %v3249_v55  ;;  %v3273_v10 = vpop.permute.xlu2 %1585 }
 0x3cb   :  { %2208 = vtanh.f32 %v1373_v11  ;;  %1469 = vmatmul.bf16.gmra.mxu1 %v3136_v14 }
 0x3cc   :  { %v1665_v63 = vadd.f32 %v1635_v32, %v1633_v12  ;;  %v1339_v32 = vadd.f32 %v1338_v34, %v3226_v53 }
 0x3d0   :  { %v1374_v3 = vpop.f32.mrf.mxu1 }
 0x3d1   :  { %v2209_v40 = vpop.eup %2208  ;;  %v1375_v46 = vadd.f32 %v1374_v3, %v1326_v27 }
 0x3d2   :  { %v1637_v7 = vmul.f32 %v2209_v40, %v3255_v44  ;;  %v3277_v40 = vpop.permute.xlu0 %1590 }
 0x3d3   :  { %2210 = vtanh.f32 %v1375_v46 }
 0x3d4   :  { %v1666_v4 = vadd.f32 %v1665_v63, %v1637_v7  ;;  %v1345_v63 = vpop.f32.mrf.mxu0  ;;  %v1341_v7 = vadd.f32 %v1340_v52, %v3229_v43 }
 0x3d8   :  { %v1377_v60 = vpop.f32.mrf.mxu1 }
 0x3d9   :  { %v2211_v21 = vpop.eup %2210  ;;  %v1378_v14 = vadd.f32 %v1377_v60, %v1329_v2  ;;  %v3282_v60 = vpop.permute.xlu1 %1595 }
 0x3da   :  { %v1639_v54 = vmul.f32 %v2211_v21, %v3259_v48 }
 0x3db   :  { %2212 = vtanh.f32 %v1378_v14  ;;  %1474 = vmatmul.bf16.gmra.mxu1 %v3158_v18 }
 0x3dc   :  { %v1667_v62 = vadd.f32 %v1666_v4, %v1639_v54  ;;  %v1348_v14 = vpop.f32.mrf.mxu0 }
 0x3e0   :  { %v1379_v45 = vpop.f32.mrf.mxu1 }
 0x3e1   :  { %v2213_v0 = vpop.eup %2212  ;;  %v1380_v39 = vadd.f32 %v1379_v45, %v1331_v20 }
 0x3e2   :  { %v1641_v19 = vmul.f32 %v2213_v0, %v3264_v56  ;;  %v3286_v0 = vpop.permute.xlu2 %1600 }
 0x3e3   :  { %2214 = vtanh.f32 %v1380_v39 }
 0x3e4   :  { %v1668_v61 = vadd.f32 %v1667_v62, %v1641_v19  ;;  %v1344_v62 = vadd.f32 %v1343_v5, %v3231_v37  ;;  %v1350_v19 = vpop.f32.mrf.mxu0 }
 0x3e8   :  { %v1382_v51 = vpop.f32.mrf.mxu1 }
 0x3e9   :  { %v2215_v28 = vpop.eup %2214  ;;  %v1383_v18 = vadd.f32 %v1382_v51, %v1334_v1 }
 0x3ea   :  { %v1643_v57 = vmul.f32 %v2215_v28, %v3268_v6  ;;  %v3291_v28 = vpop.permute.xlu0 %1605 }
 0x3eb   :  { %2216 = vtanh.f32 %v1383_v18  ;;  %1479 = vmatmul.bf16.gmra.mxu1 %v3168_v36 }
 0x3ec   :  { %v1669_v22 = vadd.f32 %v1668_v61, %v1643_v57  ;;  %v1346_v61 = vadd.f32 %v1345_v63, %v3233_v47  ;;  %v1416_v5 = vpop.f32.mrf.mxu0 }
 0x3f0   :  { %v1384_v16 = vpop.f32.mrf.mxu1 }
 0x3f1   :  { %v2217_v24 = vpop.eup %2216  ;;  %v1385_v11 = vadd.f32 %v1384_v16, %v1336_v13  ;;  %v1349_v13 = vadd.f32 %v1348_v14, %v3237_v59 }
 0x3f2   :  { %v1645_v9 = vmul.f32 %v2217_v24, %v3273_v10 }
 0x3f3   :  { %2218 = vtanh.f32 %v1385_v11  ;;  %v3295_v11 = vpop.permute.xlu1 %1610 }
 0x3f4   :  { %v1670_v12 = vadd.f32 %v1669_v22, %v1645_v9  ;;  %v1418_v63 = vpop.f32.mrf.mxu0 }
 0x3f8   :  { %v1387_v27 = vpop.f32.mrf.mxu1 }
 0x3f9   :  { %v2219_v3 = vpop.eup %2218  ;;  %v1388_v36 = vadd.f32 %v1387_v27, %v1339_v32  ;;  %v1351_v32 = vadd.f32 %v1350_v19, %v3239_v33 }
 0x3fa   :  { %v1647_v46 = vmul.f32 %v2219_v3, %v3277_v40 }
 0x3fb   :  { %2220 = vtanh.f32 %v1388_v36  ;;  %1484 = vmatmul.bf16.gmra.mxu1 %v3178_v35  ;;  %v3300_v36 = vpop.permute.xlu2 %1615 }
 0x3fc   :  { %v1671_v26 = vadd.f32 %v1670_v12, %v1647_v46 }
 0x400   :  { %v1389_v4 = vpop.f32.mrf.mxu1 }
 0x401   :  { %v2221_v2 = vpop.eup %2220  ;;  %v1390_v21 = vadd.f32 %v1389_v4, %v1341_v7 }
 0x402   :  { %v1649_v34 = vmul.f32 %v2221_v2, %v3282_v60 }
 0x403   :  { %2222 = vtanh.f32 %v1390_v21 }
 0x404   :  { %v1672_v54 = vadd.f32 %v1671_v26, %v1649_v34  ;;  %v1353_v26 = vpop.f32.mrf.mxu2  ;;  %v3304_v34 = vpop.permute.xlu0 %1620 }
 0x405   :  { %v1354_v2 = vadd.f32 %v1353_v26, %v3241_v17 }
 0x408   :  { %v1392_v20 = vpop.f32.mrf.mxu1 }
 0x409   :  { %v2223_v45 = vpop.eup %2222  ;;  %v1393_v35 = vadd.f32 %v1392_v20, %v1344_v62 }
 0x40a   :  { %v1651_v39 = vmul.f32 %v2223_v45, %v3286_v0 }
 0x40b   :  { %2224 = vtanh.f32 %v1393_v35  ;;  %1489 = vmatmul.bf16.gmra.mxu1 %v3188_v15 }
 0x40c   :  { %v1673_v52 = vadd.f32 %v1672_v54, %v1651_v39  ;;  %v1421_v54 = vpop.f32.mrf.mxu0  ;;  %v1355_v20 = vpop.f32.mrf.mxu2 }
 0x40d   :  { %v1356_v35 = vadd.f32 %v1355_v20, %v3244_v29 }
 0x410   :  { %v1394_v1 = vpop.f32.mrf.mxu1 }
 0x411   :  { %v2225_v51 = vpop.eup %2224  ;;  %v1395_v18 = vadd.f32 %v1394_v1, %v1346_v61 }
 0x412   :  { %v1653_v57 = vmul.f32 %v2225_v51, %v3291_v28 }
 0x413   :  { %2226 = vtanh.f32 %v1395_v18 }
 0x414   :  { %v1674_v22 = vadd.f32 %v1673_v52, %v1653_v57  ;;  %v3309_v52 = vpop.permute.xlu1 %1625  ;;  %v1423_v51 = vpop.f32.mrf.mxu0  ;;  %v1417_v57 = vadd.f32 %v1416_v5, %v3198_v23 }
 0x418   :  { %v1397_v16 = vpop.f32.mrf.mxu1 }
 0x419   :  { %v2227_v24 = vpop.eup %2226  ;;  %v1398_v15 = vadd.f32 %v1397_v16, %v1349_v13  ;;  %v3313_v16 = vpop.permute.xlu2 %1630 }
 0x41a   :  { %v1655_v9 = vmul.f32 %v2227_v24, %v3295_v11 }
 0x41b   :  { %2228 = vtanh.f32 %v1398_v15  ;;  %1494 = vmatmul.bf16.gmra.mxu1 %v3204_v25 }
 0x41c   :  { %v1675_v12 = vadd.f32 %v1674_v22, %v1655_v9  ;;  %v1426_v9 = vpop.f32.mrf.mxu0 }
 0x420   :  { %v1399_v27 = vpop.f32.mrf.mxu1 }
 0x421   :  { %v2229_v3 = vpop.eup %2228  ;;  %v1400_v46 = vadd.f32 %v1399_v27, %v1351_v32 }
 0x422   :  { %v1657_v7 = vmul.f32 %v2229_v3, %v3300_v36 }
 0x423   :  { %2230 = vtanh.f32 %v1400_v46  ;;  %v1422_v46 = vadd.f32 %v1421_v54, %v3202_v42  ;;  %v1427_v54 = vadd.f32 %v1426_v9, %v3210_v8 }
 0x424   :  { %v1676_v4 = vadd.f32 %v1675_v12, %v1657_v7  ;;  %v1419_v12 = vadd.f32 %v1418_v63, %v3200_v30  ;;  %v1428_v23 = vpop.f32.mrf.mxu0 }
 0x428   :  { %v1402_v21 = vpop.f32.mrf.mxu1 }
 0x429   :  { %v2231_v14 = vpop.eup %2230  ;;  %v1403_v25 = vadd.f32 %v1402_v21, %v1354_v2 }
 0x42a   :  { %v1659_v62 = vmul.f32 %v2231_v14, %v3304_v34  ;;  %v1424_v14 = vadd.f32 %v1423_v51, %v3208_v58 }
 0x42b   :  { %2232 = vtanh.f32 %v1403_v25  ;;  %1499 = vmatmul.bf16.gmra.mxu1 %v3220_v50 }
 0x42c   :  { %v1677_v45 = vadd.f32 %v1676_v4, %v1659_v62  ;;  %v1431_v62 = vpop.f32.mrf.mxu0 }
 0x430   :  { %v1404_v39 = vpop.f32.mrf.mxu1 }
 0x431   :  { %v2233_v19 = vpop.eup %2232  ;;  %v1405_v61 = vadd.f32 %v1404_v39, %v1356_v35 }
 0x432   :  { %v1661_v1 = vmul.f32 %v2233_v19, %v3309_v52 }
 0x433   :  { %2234 = vtanh.f32 %v1405_v61 }
 0x434   :  { %v1678_v18 = vadd.f32 %v1677_v45, %v1661_v1 }
 0x438   :  { %v1465_v22 = vpop.f32.mrf.mxu1 }
 0x439   :  { %v2235_v13 = vpop.eup %2234  ;;  %v1466_v50 = vadd.f32 %v1465_v22, %v1417_v57 }
 0x43a   :  { %v1663_v24 = vmul.f32 %v2235_v13, %v3313_v16 }
 0x43b   :  { %2236 = vtanh.f32 %v1466_v50 }
 0x43c   :  { %v3316_v15 = vadd.f32 %v1678_v18, %v1663_v24 }
 0x440   :  { %v1467_v32 = vpop.f32.mrf.mxu1 }
 0x441   :  { %v1468_v27 = vadd.f32 %v1467_v32, %v1419_v12  ;;  %v2237_v3 = vpop.eup %2236 }
 0x442   :  { %v1634_v4 = vmul.f32 %v2237_v3, %v3247_v38 }
 0x443   :  { %2238 = vtanh.f32 %v1468_v27  ;;  %v1432_v27 = vadd.f32 %v1431_v62, %v3222_v31 }
 0x448   :  { %v1470_v5 = vpop.f32.mrf.mxu1 }
 0x449   :  { %v2239_v26 = vpop.eup %2238  ;;  %v1471_v7 = vadd.f32 %v1470_v5, %v1422_v46 }
 0x44a   :  { %v1636_v2 = vmul.f32 %v2239_v26, %v3249_v55  ;;  %v1433_v55 = vpop.f32.mrf.mxu0 }
 0x44b   :  { %2240 = vtanh.f32 %v1471_v7 }
 0x44c   :  { %v1686_v21 = vadd.f32 %v1636_v2, %v1634_v4 }
 0x450   :  { %v1472_v30 = vpop.f32.mrf.mxu1 }
 0x451   :  { %v2241_v63 = vpop.eup %2240  ;;  %v1473_v25 = vadd.f32 %v1472_v30, %v1424_v14 }
 0x452   :  { %v1638_v20 = vmul.f32 %v2241_v63, %v3255_v44  ;;  %v1436_v18 = vpop.f32.mrf.mxu0 }
 0x453   :  { %2242 = vtanh.f32 %v1473_v25  ;;  %v1437_v7 = vadd.f32 %v1436_v18, %v3226_v53 }
 0x454   :  { %v1687_v42 = vadd.f32 %v1686_v21, %v1638_v20 }
 0x458   :  { %v1475_v45 = vpop.f32.mrf.mxu1 }
 0x459   :  { %v2243_v35 = vpop.eup %2242  ;;  %v1476_v39 = vadd.f32 %v1475_v45, %v1427_v54 }
 0x45a   :  { %v1640_v38 = vmul.f32 %v2243_v35, %v3259_v48  ;;  %v1438_v44 = vpop.f32.mrf.mxu0  ;;  %v1429_v48 = vadd.f32 %v1428_v23, %v3212_v49 }
 0x45b   :  { %2244 = vtanh.f32 %v1476_v39  ;;  %v1439_v2 = vadd.f32 %v1438_v44, %v3229_v43 }
 0x45c   :  { %v1688_v19 = vadd.f32 %v1687_v42, %v1640_v38 }
 0x460   :  { %v1477_v61 = vpop.f32.mrf.mxu1 }
 0x461   :  { %v2245_v58 = vpop.eup %2244  ;;  %v1478_v3 = vadd.f32 %v1477_v61, %v1429_v48 }
 0x462   :  { %v1642_v1 = vmul.f32 %v2245_v58, %v3264_v56  ;;  %v1441_v50 = vpop.f32.mrf.mxu0  ;;  %v1434_v56 = vadd.f32 %v1433_v55, %v3224_v41 }
 0x463   :  { %2246 = vtanh.f32 %v1478_v3  ;;  %v1442_v14 = vadd.f32 %v1441_v50, %v3231_v37 }
 0x464   :  { %v1689_v51 = vadd.f32 %v1688_v19, %v1642_v1 }
 0x468   :  { %v1480_v57 = vpop.f32.mrf.mxu1 }
 0x469   :  { %v1481_v26 = vadd.f32 %v1480_v57, %v1432_v27  ;;  %v2247_v31 = vpop.eup %2246 }
 0x46a   :  { %v1443_v24 = vpop.f32.mrf.mxu0  ;;  %v1644_v43 = vmul.f32 %v2247_v31, %v3268_v6  ;;  %v1722_v31 = vlaneseq }
 0x46b   :  { %2248 = vtanh.f32 %v1481_v26  ;;  %v1444_v30 = vadd.f32 %v1443_v24, %v3233_v47 }
 0x46c   :  { %v1690_v39 = vadd.f32 %v1689_v51, %v1644_v43  ;;  %vm1724_vm2 = vcmp.lt.s32.totalorder %v1722_v31, 256 }
 0x470   :  { %v1482_v22 = vpop.f32.mrf.mxu1 }
 0x471   :  { %v1483_v4 = vadd.f32 %v1482_v22, %v1434_v56  ;;  %v2249_v25 = vpop.eup %2248 }
 0x472   :  { %v1446_v12 = vpop.f32.mrf.mxu0  ;;  %v1646_v54 = vmul.f32 %v2249_v25, %v3273_v10 }
 0x473   :  { %2250 = vtanh.f32 %v1483_v4  ;;  %v1447_v53 = vadd.f32 %v1446_v12, %v3237_v59 }
 0x474   :  { %v1691_v6 = vadd.f32 %v1690_v39, %v1646_v54 }
 0x478   :  { %v1485_v13 = vpop.f32.mrf.mxu1 }
 0x479   :  { %v1486_v21 = vadd.f32 %v1485_v13, %v1437_v7  ;;  %v2251_v20 = vpop.eup %2250 }
 0x47a   :  { %v1448_v46 = vpop.f32.mrf.mxu0  ;;  %v1648_v38 = vmul.f32 %v2251_v20, %v3277_v40 }
 0x47b   :  { %2252 = vtanh.f32 %v1486_v21  ;;  %v1449_v42 = vadd.f32 %v1448_v46, %v3239_v33 }
 0x47c   :  { %v1692_v1 = vadd.f32 %v1691_v6, %v1648_v38 }
 0x480   :  { %v1487_v8 = vpop.f32.mrf.mxu1 }
 0x481   :  { %v1488_v49 = vadd.f32 %v1487_v8, %v1439_v2  ;;  %v2253_v45 = vpop.eup %2252 }
 0x482   :  { %v1451_v41 = vpop.f32.mrf.mxu0  ;;  %v1650_v61 = vmul.f32 %v2253_v45, %v3282_v60 }
 0x483   :  { %2254 = vtanh.f32 %v1488_v49  ;;  %v1452_v47 = vadd.f32 %v1451_v41, %v3241_v17 }
 0x484   :  { %v1693_v17 = vadd.f32 %v1692_v1, %v1650_v61 }
 0x488   :  { %v1490_v9 = vpop.f32.mrf.mxu1 }
 0x489   :  { %v1491_v63 = vadd.f32 %v1490_v9, %v1442_v14  ;;  %v2255_v55 = vpop.eup %2254  ;;  %v1711_v14 = vpop.permute.xlu0 %1710 }
 0x48a   :  { %v1453_v58 = vpop.f32.mrf.mxu0  ;;  %v1652_v10 = vmul.f32 %v2255_v55, %v3286_v0  ;;  %v1680_v0 = vrot.slane %v3316_v15, 4  ;;  %v1713_v49 = vperm.slane %v1711_v14, 0 }
 0x48b   :  { %2256 = vtanh.f32 %v1491_v63  ;;  %v1454_v40 = vadd.f32 %v1453_v58, %v3244_v29 }
 0x48c   :  { %v1694_v44 = vadd.f32 %v1693_v17, %v1652_v10  ;;  %v1681_v29 = vadd.f32 %v1680_v0, %v3316_v15 }
 0x490   :  { %v1492_v32 = vpop.f32.mrf.mxu1 }
 0x491   :  { %v1493_v62 = vadd.f32 %v1492_v32, %v1444_v30  ;;  %v2257_v33 = vpop.eup %2256 }
 0x492   :  { %v1654_v51 = vmul.f32 %v2257_v33, %v3291_v28 }
 0x493   :  { %2258 = vtanh.f32 %v1493_v62 }
 0x494   :  { %v1695_v8 = vadd.f32 %v1694_v44, %v1654_v51 }
 0x498   :  { %v1495_v5 = vpop.f32.mrf.mxu1 }
 0x499   :  { %v1496_v37 = vadd.f32 %v1495_v5, %v1447_v53  ;;  %v2259_v18 = vpop.eup %2258  ;;  %v1682_v5 = vrot.slane %v1681_v29, 2 }
 0x49a   :  { %v1656_v22 = vmul.f32 %v2259_v18, %v3295_v11 }
 0x49b   :  { %2260 = vtanh.f32 %v1496_v37  ;;  %v1683_v7 = vadd.f32 %v1682_v5, %v1681_v29 }
 0x49c   :  { %v1696_v12 = vadd.f32 %v1695_v8, %v1656_v22 }
 0x49d   :  { %v1684_v2 = vrot.slane %v1683_v7, 1 }
 0x4a0   :  { %v1497_v23 = vpop.f32.mrf.mxu1 }
 0x4a1   :  { %v1498_v35 = vadd.f32 %v1497_v23, %v1449_v42  ;;  %v2261_v57 = vpop.eup %2260  ;;  %v1685_v23 = vadd.f32 %v1684_v2, %v1683_v7 }
 0x4a2   :  { %v1658_v24 = vmul.f32 %v2261_v57, %v3300_v36 }
 0x4a3   :  { %2262 = vtanh.f32 %v1498_v35 }
 0x4a4   :  { %v1697_v28 = vadd.f32 %v1696_v12, %v1658_v24 }
 0x4a8   :  { %v1500_v59 = vpop.f32.mrf.mxu1 }
 0x4a9   :  { %v1501_v19 = vadd.f32 %v1500_v59, %v1452_v47  ;;  %v2263_v50 = vpop.eup %2262 }
 0x4aa   :  { %v1660_v32 = vmul.f32 %v2263_v50, %v3304_v34 }
 0x4ab   :  { %2264 = vtanh.f32 %v1501_v19 }
 0x4ac   :  { %v1698_v27 = vadd.f32 %v1697_v28, %v1660_v32 }
 0x4b0   :  { %v1502_v13 = vpop.f32.mrf.mxu1 }
 0x4b1   :  { %v1503_v60 = vadd.f32 %v1502_v13, %v1454_v40  ;;  %v2265_v9 = vpop.eup %2264 }
 0x4b2   :  { %v1662_v48 = vmul.f32 %v2265_v9, %v3309_v52 }
 0x4b3   :  { %2266 = vtanh.f32 %v1503_v60 }
 0x4b4   :  { %v1699_v3 = vadd.f32 %v1698_v27, %v1662_v48 }
 0x4b9   :  { %v2267_v11 = vpop.eup %2266 }
 0x4ba   :  { %v1664_v46 = vmul.f32 %v2267_v11, %v3313_v16  ;;  %v1714_v16 = vadd.f32 %v1713_v49, %v1685_v23 }
 0x4bc   :  { %v1700_v56 = vadd.f32 %v1699_v3, %v1664_v46 }
 0x4be   :  { %v1701_v36 = vrot.slane %v1700_v56, 4 }
 0x4c0   :  { %v1702_v26 = vadd.f32 %v1701_v36, %v1700_v56 }
 0x4c2   :  { %v1703_v4 = vrot.slane %v1702_v26, 2 }
 0x4c4   :  { %v1704_v21 = vadd.f32 %v1703_v4, %v1702_v26 }
 0x4c6   :  { %v1705_v34 = vrot.slane %v1704_v21, 1 }
 0x4c8   :  { %v1706_v52 = vadd.f32 %v1705_v34, %v1704_v21 }
 0x4ca   :  { %v1715_v15 = vadd.f32 %v1713_v49, %v1706_v52 }
 0x4cc   :  { %v1718_v30 = vrot.slane %v1715_v15, 7 }
 0x4ce   :  { %v1720_v63 = vsel %vm1719_vm1, %v1714_v16, %v1718_v30 }
 0x4cf   :  { %1726 = vst.msk [vmem:[#allocation3] sm:$0x3] %vm1724_vm2, %v1720_v63 }
 0x4d0   :  { %1737 = dma.vmem_to_hbm [thread:$0]  %s1733_s23, 32, %s1735_s10, [#allocation4]  }
 0x4d1   :  { %2292 = dma.done.wait [#allocation4], 32  }
 0x4d2   :  { %2293 = vsyncadd [#allocation4], 4294967264 }
 0x4d3   :  { %1742 = vsyncpa [#allocation4], 1 }

</bundles_post_ra>
